<compile_context>
chip_gen: v6e
topology: v6e:2x2x1
jax: 0.10.0
libtpu: 0.0.40
codegen_flags: <defaults>
</compile_context>

<pallas_src>
import jax
import jax.numpy as jnp
from jax.experimental import pallas as pl
from jax.experimental.pallas import tpu as pltpu

# True model dims (PyTorch spec).
GEN_HID_1 = 50
GEN_HID_2 = 150
GEN_HID_3 = 300
GEN_HID_4 = 600
GEN_OUT = 2

BN_EPS = 1e-5
LEAKY_SLOPE = 0.01


def _ceil_to(n, m):
    return ((n + m - 1) // m) * m


# Lane-padded feature widths used inside the kernel (all multiples of 128).
H1_PAD = _ceil_to(GEN_HID_1, 128)   # 128
H2_PAD = _ceil_to(GEN_HID_2, 128)   # 256
H3_PAD = _ceil_to(GEN_HID_3, 128)   # 384
H4_PAD = _ceil_to(GEN_HID_4, 128)   # 640
OUT_PAD = _ceil_to(GEN_OUT, 128)    # 128

# Packed-bias layout: each (padded-width) bias segment starts at a
# 128-lane-aligned offset and has a 128-multiple width -> no slice ever
# crosses an (8,128) tile boundary.
B1_OFF = 0
B2_OFF = B1_OFF + H1_PAD            # 128
B3_OFF = B2_OFF + H2_PAD            # 384
B4_OFF = B3_OFF + H3_PAD            # 768
B5_OFF = B4_OFF + H4_PAD            # 1408
BIAS_TOTAL = B5_OFF + OUT_PAD       # 1536

# Batch tile alignment: 16 keeps the bf16 output block native-tile aligned
# (bf16 sublane tile = 16) and is trivially a multiple of f32's 8.
SUBLANE = 16


def _leaky_relu(x):
    return jnp.where(x > 0, x, LEAKY_SLOPE * x)


def _generator_kernel(noise_ref,
                      w1_ref, w2_ref, w3_ref, w4_ref, w5_ref,
                      bias_ref,
                      out_ref):
    # Matmuls: bf16 operands on the MXU, f32 accumulation.
    # Elementwise path (bias add, leaky-relu, tanh) stays in f32.
    x = noise_ref[...].astype(jnp.bfloat16)                               # (TB, D_in)

    # fc1 -> LeakyReLU (dropout = identity in eval)
    h = jnp.dot(x, w1_ref[...], preferred_element_type=jnp.float32)
    h = _leaky_relu(h + bias_ref[:, B1_OFF:B1_OFF + H1_PAD])

    # bn1 folded into fc2 -> LeakyReLU
    h = jnp.dot(h.astype(jnp.bfloat16), w2_ref[...],
                preferred_element_type=jnp.float32)
    h = _leaky_relu(h + bias_ref[:, B2_OFF:B2_OFF + H2_PAD])

    # bn2 folded into fc3 -> LeakyReLU
    h = jnp.dot(h.astype(jnp.bfloat16), w3_ref[...],
                preferred_element_type=jnp.float32)
    h = _leaky_relu(h + bias_ref[:, B3_OFF:B3_OFF + H3_PAD])

    # bn3 folded into fc4 -> LeakyReLU
    h = jnp.dot(h.astype(jnp.bfloat16), w4_ref[...],
                preferred_element_type=jnp.float32)
    h = _leaky_relu(h + bias_ref[:, B4_OFF:B4_OFF + H4_PAD])

    # fc5 (128 padded output lanes) -> tanh, lane-dense bf16 store
    y = jnp.dot(h.astype(jnp.bfloat16), w5_ref[...],
                preferred_element_type=jnp.float32)
    y = y + bias_ref[:, B5_OFF:B5_OFF + OUT_PAD]
    out_ref[...] = jnp.tanh(y).astype(out_ref.dtype)


def init_generator_params(key, input_size):
    """Raw parameters matching the PyTorch module's shapes (f32).

    Linear weights ~ N(0, 0.04) (as in init_weights); biases use a small
    deterministic uniform init. BatchNorm uses default gamma=1, beta=0,
    running_mean=0, running_var=1 (eval mode).
    """
    dims = [input_size, GEN_HID_1, GEN_HID_2, GEN_HID_3, GEN_HID_4, GEN_OUT]
    params = {}
    keys = jax.random.split(key, 10)
    for i in range(5):
        fan_in, fan_out = dims[i], dims[i + 1]
        w = 0.04 * jax.random.normal(keys[2 * i], (fan_in, fan_out), jnp.float32)
        bound = 1.0 / jnp.sqrt(float(fan_in))
        b = jax.random.uniform(keys[2 * i + 1], (1, fan_out), jnp.float32,
                               minval=-bound, maxval=bound)
        params[f"w{i+1}"] = w
        params[f"b{i+1}"] = b
    for j, feat in enumerate([GEN_HID_1, GEN_HID_2, GEN_HID_3], start=1):
        gamma = jnp.ones((1, feat), jnp.float32)
        beta = jnp.zeros((1, feat), jnp.float32)
        running_mean = jnp.zeros((1, feat), jnp.float32)
        running_var = jnp.ones((1, feat), jnp.float32)
        scale = gamma / jnp.sqrt(running_var + BN_EPS)
        shift = beta - running_mean * scale
        params[f"bn{j}_scale"] = scale
        params[f"bn{j}_shift"] = shift
    return params


def _fold_bn_into_linear(scale, shift, w, b):
    """(x*scale + shift) @ w + b  ==  x @ (scale^T * w) + (shift @ w + b).

    Exact in eval mode (per-feature affine); done in f32 before the bf16 cast.
    NOTE: with real running stats (tiny running_var -> large folded scale) the
    bf16 rounding of the folded weights grows relative error — re-validate the
    output tolerance with realistic BN statistics if they differ from defaults.
    """
    w_folded = w * scale.reshape(-1, 1)
    b_folded = b + shift @ w
    return w_folded, b_folded


def _pad2(a, rows, cols):
    """Zero-pad a 2-D array to (rows, cols)."""
    return jnp.zeros((rows, cols), a.dtype).at[:a.shape[0], :a.shape[1]].set(a)


def prepare_generator_params(params):
    """Fold BN affines, zero-pad all feature dims to lane multiples,
    pack biases into one lane-aligned vector, cast weights to bf16."""
    d_in = params["w1"].shape[0]
    w1, b1 = params["w1"], params["b1"]
    w2, b2 = _fold_bn_into_linear(params["bn1_scale"], params["bn1_shift"],
                                  params["w2"], params["b2"])
    w3, b3 = _fold_bn_into_linear(params["bn2_scale"], params["bn2_shift"],
                                  params["w3"], params["b3"])
    w4, b4 = _fold_bn_into_linear(params["bn3_scale"], params["bn3_shift"],
                                  params["w4"], params["b4"])
    w5, b5 = params["w5"], params["b5"]

    # Zero-pad every feature dim to its lane-padded width. Padded activation
    # columns stay exactly zero through leaky-relu, so this is exact.
    w1p = _pad2(w1, d_in, H1_PAD)
    w2p = _pad2(w2, H1_PAD, H2_PAD)
    w3p = _pad2(w3, H2_PAD, H3_PAD)
    w4p = _pad2(w4, H3_PAD, H4_PAD)
    w5p = _pad2(w5, H4_PAD, OUT_PAD)

    bias = jnp.zeros((1, BIAS_TOTAL), jnp.float32)
    bias = bias.at[:, B1_OFF:B1_OFF + GEN_HID_1].set(b1)
    bias = bias.at[:, B2_OFF:B2_OFF + GEN_HID_2].set(b2)
    bias = bias.at[:, B3_OFF:B3_OFF + GEN_HID_3].set(b3)
    bias = bias.at[:, B4_OFF:B4_OFF + GEN_HID_4].set(b4)
    bias = bias.at[:, B5_OFF:B5_OFF + GEN_OUT].set(b5)

    return {
        "w1": w1p.astype(jnp.bfloat16),
        "w2": w2p.astype(jnp.bfloat16),
        "w3": w3p.astype(jnp.bfloat16),
        "w4": w4p.astype(jnp.bfloat16),
        "w5": w5p.astype(jnp.bfloat16),
        "bias": bias,                      # f32, added after f32 accumulation
    }


def generator_forward(noise, prepared, *, block_batch=2048):
    """Run the generator. `prepared` comes from prepare_generator_params.

    block_batch=2048 is safe on all generations (VMEM footprint < ~12 MiB);
    on v5e/v6e it can be pushed to 4096 with vmem_limit_bytes raised.
    """
    batch, d_in = noise.shape

    # Pad batch to the sublane tile, then pick a batch tile that (a) is at
    # most block_batch and (b) yields >= 2 grid steps whenever the batch can
    # be split at sublane granularity -> v7x shards across both TensorCores.
    padded_batch = _ceil_to(batch, SUBLANE)
    tb = min(block_batch, _ceil_to(pl.cdiv(padded_batch, 2), SUBLANE))
    padded_batch = _ceil_to(padded_batch, tb)
    if padded_batch != batch:
        noise = jnp.pad(noise, ((0, padded_batch - batch), (0, 0)))
    grid = (padded_batch // tb,)

    w1, w2, w3, w4, w5 = (prepared[k] for k in ("w1", "w2", "w3", "w4", "w5"))
    bias = prepared["bias"]

    def const_spec(arr):
        # Full-array block, constant index map -> VMEM-resident across the grid.
        return pl.BlockSpec(arr.shape, lambda i: (0,) * arr.ndim)

    in_specs = [
        pl.BlockSpec((tb, d_in), lambda i: (i, 0)),     # noise: tiled over batch
        const_spec(w1), const_spec(w2), const_spec(w3),
        const_spec(w4), const_spec(w5),
        const_spec(bias),
    ]
    out_specs = pl.BlockSpec((tb, OUT_PAD), lambda i: (i, 0))

    flops = 2 * padded_batch * (d_in * H1_PAD + H1_PAD * H2_PAD
                                + H2_PAD * H3_PAD + H3_PAD * H4_PAD
                                + H4_PAD * OUT_PAD)
    bytes_accessed = (noise.size * 4
                      + sum(int(w.size) * 2 for w in (w1, w2, w3, w4, w5))
                      + bias.size * 4
                      + padded_batch * OUT_PAD * 2)     # bf16 output

    out = pl.pallas_call(
        _generator_kernel,
        out_shape=jax.ShapeDtypeStruct((padded_batch, OUT_PAD), jnp.bfloat16),
        grid=grid,
        in_specs=in_specs,
        out_specs=out_specs,
        compiler_params=pltpu.CompilerParams(
            dimension_semantics=("parallel",)),       # v7x: shard batch over 2 TCs
        cost_estimate=pl.CostEstimate(
            flops=flops,
            transcendentals=padded_batch * OUT_PAD,
            bytes_accessed=bytes_accessed),
    )(noise, w1, w2, w3, w4, w5, bias)

    # NOTE: keep this slice — padded rows/columns carry garbage/tanh(bias).
    return out[:batch, :GEN_OUT].astype(jnp.float32)


def _reference_forward(noise, params):
    """Pure-JAX f32 reference (eval-mode, unfolded, unpadded) for correctness."""
    h = _leaky_relu(noise @ params["w1"] + params["b1"])
    h = h * params["bn1_scale"] + params["bn1_shift"]
    h = _leaky_relu(h @ params["w2"] + params["b2"])
    h = h * params["bn2_scale"] + params["bn2_shift"]
    h = _leaky_relu(h @ params["w3"] + params["b3"])
    h = h * params["bn3_scale"] + params["bn3_shift"]
    h = _leaky_relu(h @ params["w4"] + params["b4"])
    return jnp.tanh(h @ params["w5"] + params["b5"])


if __name__ == "__main__":
    batch = 32          # small, but large enough for a 2-step grid (tb = 16)
    input_size = 8

    key = jax.random.PRNGKey(0)
    k_noise, k_params = jax.random.split(key)
    noise = jax.random.normal(k_noise, (batch, input_size), jnp.float32)
    params = init_generator_params(k_params, input_size)
    prepared = prepare_generator_params(params)

    out = generator_forward(noise, prepared)
    out = jax.block_until_ready(out)

    ref = _reference_forward(noise, params)
    assert out.shape == (batch, GEN_OUT)
    # bf16 matmul operands + bf16 output store (f32 accumulation/elementwise):
    # expect ~1e-3..1e-2 error on tanh outputs.
    assert jnp.allclose(out, ref, atol=2e-2, rtol=1e-2), "mismatch vs JAX reference"

    print("KERNEL_OK")
</pallas_src>

<mosaic_0001>
module attributes {stable_mosaic.version = 11 : i64} {
  func.func @_generator_kernel(%arg0: i32, %arg1: memref<16x8xf32, #tpu.memory_space<vmem>>, %arg2: memref<8x128xbf16, #tpu.memory_space<vmem>>, %arg3: memref<128x256xbf16, #tpu.memory_space<vmem>>, %arg4: memref<256x384xbf16, #tpu.memory_space<vmem>>, %arg5: memref<384x640xbf16, #tpu.memory_space<vmem>>, %arg6: memref<640x128xbf16, #tpu.memory_space<vmem>>, %arg7: memref<1x1536xf32, #tpu.memory_space<vmem>>, %arg8: memref<16x128xbf16, #tpu.memory_space<vmem>>) attributes {dimension_semantics = [#tpu.dimension_semantics<parallel>], iteration_bounds = array<i64: 2>, scalar_prefetch = 0 : i64, scratch_operands = 0 : i64, tpu.core_type = #tpu.core_type<tc>, window_params = [{transform_indices = @transform_0, window_bounds = array<i64: 16, 8>}, {pipeline_mode = #tpu.pipeline_mode<synchronous>, transform_indices = @transform_1, window_bounds = array<i64: 8, 128>}, {pipeline_mode = #tpu.pipeline_mode<synchronous>, transform_indices = @transform_2, window_bounds = array<i64: 128, 256>}, {pipeline_mode = #tpu.pipeline_mode<synchronous>, transform_indices = @transform_3, window_bounds = array<i64: 256, 384>}, {pipeline_mode = #tpu.pipeline_mode<synchronous>, transform_indices = @transform_4, window_bounds = array<i64: 384, 640>}, {pipeline_mode = #tpu.pipeline_mode<synchronous>, transform_indices = @transform_5, window_bounds = array<i64: 640, 128>}, {pipeline_mode = #tpu.pipeline_mode<synchronous>, transform_indices = @transform_6, window_bounds = array<i64: 1, 1536>}, {transform_indices = @transform_7, window_bounds = array<i64: 16, 128>}]} {
    %c0 = arith.constant 0 : index
    %c0_0 = arith.constant 0 : index
    %0 = vector.load %arg1[%c0, %c0_0] : memref<16x8xf32, #tpu.memory_space<vmem>>, vector<16x8xf32>
    %1 = arith.truncf %0 : vector<16x8xf32> to vector<16x8xbf16>
    %c0_1 = arith.constant 0 : index
    %c0_2 = arith.constant 0 : index
    %2 = vector.load %arg2[%c0_1, %c0_2] : memref<8x128xbf16, #tpu.memory_space<vmem>>, vector<8x128xbf16>
    %cst = arith.constant dense<0.000000e+00> : vector<16x128xf32>
    %3 = tpu.matmul %1, %2, %cst {dimension_numbers = #tpu.dot_dimension_numbers<[1], [0], [0], [1], [0, 0, 1, 1], [], []>} : vector<16x8xbf16>, vector<8x128xbf16>, vector<16x128xf32> -> vector<16x128xf32>
    %c0_3 = arith.constant 0 : index
    %c0_4 = arith.constant 0 : index
    %4 = vector.load %arg7[%c0_3, %c0_4] : memref<1x1536xf32, #tpu.memory_space<vmem>>, vector<1x128xf32>
    %5 = vector.broadcast %4 : vector<1x128xf32> to vector<16x128xf32>
    %6 = arith.addf %3, %5 : vector<16x128xf32>
    %cst_5 = arith.constant 0.000000e+00 : f32
    %7 = vector.broadcast %cst_5 : f32 to vector<16x128xf32>
    %8 = arith.cmpf ogt, %6, %7 : vector<16x128xf32>
    %cst_6 = arith.constant 0.00999999977 : f32
    %9 = vector.broadcast %cst_6 : f32 to vector<16x128xf32>
    %10 = arith.mulf %9, %6 : vector<16x128xf32>
    %11 = arith.select %8, %6, %10 : vector<16x128xi1>, vector<16x128xf32>
    %12 = arith.truncf %11 : vector<16x128xf32> to vector<16x128xbf16>
    %c0_7 = arith.constant 0 : index
    %c0_8 = arith.constant 0 : index
    %13 = vector.load %arg3[%c0_7, %c0_8] : memref<128x256xbf16, #tpu.memory_space<vmem>>, vector<128x256xbf16>
    %cst_9 = arith.constant dense<0.000000e+00> : vector<16x256xf32>
    %14 = tpu.matmul %12, %13, %cst_9 {dimension_numbers = #tpu.dot_dimension_numbers<[1], [0], [0], [1], [0, 0, 1, 1], [], []>} : vector<16x128xbf16>, vector<128x256xbf16>, vector<16x256xf32> -> vector<16x256xf32>
    %c0_10 = arith.constant 0 : index
    %c128 = arith.constant 128 : index
    %15 = vector.load %arg7[%c0_10, %c128] : memref<1x1536xf32, #tpu.memory_space<vmem>>, vector<1x256xf32>
    %16 = vector.broadcast %15 : vector<1x256xf32> to vector<16x256xf32>
    %17 = arith.addf %14, %16 : vector<16x256xf32>
    %cst_11 = arith.constant 0.000000e+00 : f32
    %18 = vector.broadcast %cst_11 : f32 to vector<16x256xf32>
    %19 = arith.cmpf ogt, %17, %18 : vector<16x256xf32>
    %cst_12 = arith.constant 0.00999999977 : f32
    %20 = vector.broadcast %cst_12 : f32 to vector<16x256xf32>
    %21 = arith.mulf %20, %17 : vector<16x256xf32>
    %22 = arith.select %19, %17, %21 : vector<16x256xi1>, vector<16x256xf32>
    %23 = arith.truncf %22 : vector<16x256xf32> to vector<16x256xbf16>
    %c0_13 = arith.constant 0 : index
    %c0_14 = arith.constant 0 : index
    %24 = vector.load %arg4[%c0_13, %c0_14] : memref<256x384xbf16, #tpu.memory_space<vmem>>, vector<256x384xbf16>
    %cst_15 = arith.constant dense<0.000000e+00> : vector<16x384xf32>
    %25 = tpu.matmul %23, %24, %cst_15 {dimension_numbers = #tpu.dot_dimension_numbers<[1], [0], [0], [1], [0, 0, 1, 1], [], []>} : vector<16x256xbf16>, vector<256x384xbf16>, vector<16x384xf32> -> vector<16x384xf32>
    %c0_16 = arith.constant 0 : index
    %c384 = arith.constant 384 : index
    %26 = vector.load %arg7[%c0_16, %c384] : memref<1x1536xf32, #tpu.memory_space<vmem>>, vector<1x384xf32>
    %27 = vector.broadcast %26 : vector<1x384xf32> to vector<16x384xf32>
    %28 = arith.addf %25, %27 : vector<16x384xf32>
    %cst_17 = arith.constant 0.000000e+00 : f32
    %29 = vector.broadcast %cst_17 : f32 to vector<16x384xf32>
    %30 = arith.cmpf ogt, %28, %29 : vector<16x384xf32>
    %cst_18 = arith.constant 0.00999999977 : f32
    %31 = vector.broadcast %cst_18 : f32 to vector<16x384xf32>
    %32 = arith.mulf %31, %28 : vector<16x384xf32>
    %33 = arith.select %30, %28, %32 : vector<16x384xi1>, vector<16x384xf32>
    %34 = arith.truncf %33 : vector<16x384xf32> to vector<16x384xbf16>
    %c0_19 = arith.constant 0 : index
    %c0_20 = arith.constant 0 : index
    %35 = vector.load %arg5[%c0_19, %c0_20] : memref<384x640xbf16, #tpu.memory_space<vmem>>, vector<384x640xbf16>
    %cst_21 = arith.constant dense<0.000000e+00> : vector<16x640xf32>
    %36 = tpu.matmul %34, %35, %cst_21 {dimension_numbers = #tpu.dot_dimension_numbers<[1], [0], [0], [1], [0, 0, 1, 1], [], []>} : vector<16x384xbf16>, vector<384x640xbf16>, vector<16x640xf32> -> vector<16x640xf32>
    %c0_22 = arith.constant 0 : index
    %c768 = arith.constant 768 : index
    %37 = vector.load %arg7[%c0_22, %c768] : memref<1x1536xf32, #tpu.memory_space<vmem>>, vector<1x640xf32>
    %38 = vector.broadcast %37 : vector<1x640xf32> to vector<16x640xf32>
    %39 = arith.addf %36, %38 : vector<16x640xf32>
    %cst_23 = arith.constant 0.000000e+00 : f32
    %40 = vector.broadcast %cst_23 : f32 to vector<16x640xf32>
    %41 = arith.cmpf ogt, %39, %40 : vector<16x640xf32>
    %cst_24 = arith.constant 0.00999999977 : f32
    %42 = vector.broadcast %cst_24 : f32 to vector<16x640xf32>
    %43 = arith.mulf %42, %39 : vector<16x640xf32>
    %44 = arith.select %41, %39, %43 : vector<16x640xi1>, vector<16x640xf32>
    %45 = arith.truncf %44 : vector<16x640xf32> to vector<16x640xbf16>
    %c0_25 = arith.constant 0 : index
    %c0_26 = arith.constant 0 : index
    %46 = vector.load %arg6[%c0_25, %c0_26] : memref<640x128xbf16, #tpu.memory_space<vmem>>, vector<640x128xbf16>
    %cst_27 = arith.constant dense<0.000000e+00> : vector<16x128xf32>
    %47 = tpu.matmul %45, %46, %cst_27 {dimension_numbers = #tpu.dot_dimension_numbers<[1], [0], [0], [1], [0, 0, 1, 1], [], []>} : vector<16x640xbf16>, vector<640x128xbf16>, vector<16x128xf32> -> vector<16x128xf32>
    %c0_28 = arith.constant 0 : index
    %c1408 = arith.constant 1408 : index
    %48 = vector.load %arg7[%c0_28, %c1408] : memref<1x1536xf32, #tpu.memory_space<vmem>>, vector<1x128xf32>
    %49 = vector.broadcast %48 : vector<1x128xf32> to vector<16x128xf32>
    %50 = arith.addf %47, %49 : vector<16x128xf32>
    %51 = math.tanh %50 : vector<16x128xf32>
    %52 = arith.truncf %51 : vector<16x128xf32> to vector<16x128xbf16>
    %c0_29 = arith.constant 0 : index
    %c0_30 = arith.constant 0 : index
    %53 = vector.load %arg8[%c0_29, %c0_30] : memref<16x128xbf16, #tpu.memory_space<vmem>>, vector<16x128xbf16>
    tpu.vector_store %arg8[%c0_29, %c0_30], %52 {strides = array<i32>} : memref<16x128xbf16, #tpu.memory_space<vmem>>, vector<16x128xbf16>,
    return
  }
  func.func @transform_0(%arg0: i32) -> (i32, i32) {
    %c0_i32 = arith.constant 0 : i32
    %c0_i32_0 = arith.constant 0 : i32
    return %arg0, %c0_i32 : i32, i32
  }
  func.func @transform_1(%arg0: i32) -> (i32, i32) {
    %c0_i32 = arith.constant 0 : i32
    %c0_i32_0 = arith.constant 0 : i32
    %c0_i32_1 = arith.constant 0 : i32
    return %c0_i32, %c0_i32_0 : i32, i32
  }
  func.func @transform_2(%arg0: i32) -> (i32, i32) {
    %c0_i32 = arith.constant 0 : i32
    %c0_i32_0 = arith.constant 0 : i32
    %c0_i32_1 = arith.constant 0 : i32
    return %c0_i32, %c0_i32_0 : i32, i32
  }
  func.func @transform_3(%arg0: i32) -> (i32, i32) {
    %c0_i32 = arith.constant 0 : i32
    %c0_i32_0 = arith.constant 0 : i32
    %c0_i32_1 = arith.constant 0 : i32
    return %c0_i32, %c0_i32_0 : i32, i32
  }
  func.func @transform_4(%arg0: i32) -> (i32, i32) {
    %c0_i32 = arith.constant 0 : i32
    %c0_i32_0 = arith.constant 0 : i32
    %c0_i32_1 = arith.constant 0 : i32
    return %c0_i32, %c0_i32_0 : i32, i32
  }
  func.func @transform_5(%arg0: i32) -> (i32, i32) {
    %c0_i32 = arith.constant 0 : i32
    %c0_i32_0 = arith.constant 0 : i32
    %c0_i32_1 = arith.constant 0 : i32
    return %c0_i32, %c0_i32_0 : i32, i32
  }
  func.func @transform_6(%arg0: i32) -> (i32, i32) {
    %c0_i32 = arith.constant 0 : i32
    %c0_i32_0 = arith.constant 0 : i32
    %c0_i32_1 = arith.constant 0 : i32
    return %c0_i32, %c0_i32_0 : i32, i32
  }
  func.func @transform_7(%arg0: i32) -> (i32, i32) {
    %c0_i32 = arith.constant 0 : i32
    %c0_i32_0 = arith.constant 0 : i32
    return %arg0, %c0_i32 : i32, i32
  }
}

</mosaic_0001>

<bundles_post_ra>
// kernel: tpu_custom_call.1
= control target key start
LH: loop header
LB: loop body
LE: loop exit
PB: predicated region body
PF: predicated region fallthrough
CT: control target
= control target key end

     0   :  { %12 = vsyncpa [#allocation3], 0  ;;  %s3967_s0 = inlined_call_operand.vmem [shape: f32[32,8], index: 0, kind: input, shape index: {}]   ;;  %s3968_s1 = inlined_call_operand.vmem [shape: bf16[8,128], index: 1, kind: input, shape index: {}]   ;;  %s3969_s2 = inlined_call_operand.hbm [shape: bf16[128,256], index: 2, kind: input, shape index: {}]   ;;  %s3970_s3 = inlined_call_operand.hbm [shape: bf16[256,384], index: 3, kind: input, shape index: {}]   ;;  %s3971_s4 = inlined_call_operand.hbm [shape: bf16[384,640], index: 4, kind: input, shape index: {}]   ;;  %s3972_s5 = inlined_call_operand.hbm [shape: bf16[640,128], index: 5, kind: input, shape index: {}]   ;;  %s3973_s6 = inlined_call_operand.vmem [shape: f32[1,1536], index: 6, kind: input, shape index: {}]   ;;  %s3974_s7 = inlined_call_operand.hbm [shape: bf16[32,128], index: 7, kind: output, shape index: {}]  }
   0x1   :  { %13 = vsyncpa [#allocation6], 0 }
   0x2   :  { %14 = vsyncpa [#allocation9], 0 }
   0x3   :  { %15 = vsyncpa [#allocation4], 0 }
   0x4   :  { %17 = vsyncpa [#allocation4 + $0x1], 0  ;;  %s3717_s24 = smov 0   ;;  %s3719_s25 = smov 0  }
   0x5   :  { %s3721_s26 = smov 0   ;;  %s3723_s27 = smov 0  }
   0x6 LB: > { %s3738_s28 = sadd.s32 4294967295, %s3657_s27   ;;  %s2677_s29 = sadd.s32 4294967294, %s3657_s27   ;;  %s3657_s27 = sphi %s3723_s27, %s3990_s27   ;;  %s3653_s26 = sphi %s3721_s26, %s3989_s26   ;;  %s3649_s25 = sphi %s3719_s25, %s3988_s25   ;;  %s3645_s24 = sphi %s3717_s24, %s3987_s24  }
   0x7   : > { %s3742_s30 = sadd.s32 1, %s3657_s27   ;;  %s182_s8 = sadd.s32 1, %s3653_s26 }
   0x8   : > { %s179_s9 = ssub.s32 %s3657_s27, %s3742_s30  ;;  %p192_p0 = scmp.ne.s32.totalorder %s3653_s26, %s3649_s25 }
   0x9   : > { %p180_p1 = scmp.eq.s32.totalorder %s179_s9, 0  ;;  %p193_p2 = scmp.eq.s32.totalorder %s3738_s28, 1 }
   0xa   : > { %p198_p3 = scmp.ne.s32.totalorder %s3649_s25, %s3645_s24  ;;  %p199_p4 = scmp.eq.s32.totalorder %s2677_s29, 1 }
   0xb   : > { %s3753_s10 = scalar_select %p180_p1, %s3653_s26, %s182_s8  }
   0xc   : > { %p3755_p5 = por %p193_p2, %p192_p0  ;;  %p3759_p6 = por %p199_p4, %p198_p3 }
   0xd   : > { %p2678_p7 = scmp.ge.s32.totalorder %s3657_s27, 1  ;;  %p206_p8 = scmp.lt.s32.totalorder %s3657_s27, 3 }
   0xe   : > { %s3977_s12 = scalar_select %p3759_p6, 1, 0 }
   0xf   : > { %p3975_p9 = scmp.eq.s32.totalorder %s3738_s28, 0  ;;  %p3766_p10 = pnand %p2678_p7, %p206_p8 }
  0x10   : > { %s3659_s14 = smov [#allocation5]   ;;  %s3660_s17 = smov [#allocation2]  }
  0x11   : > { %s234_s15 = sshll.u32 %s3659_s14, 4  ;;  %p3106_p11 = pneg %p3766_p10  ;;  %s235_s15 = int_to_ptr.vmem [resolvable:$true] %s234_s15 }
  0x12   : > { %s221_s18 = sshll.u32 %s3660_s17, 4  ;;  %s3492_s19 = scalar_lea.vmem %s235_s15, 6144  ;;  %s222_s18 = int_to_ptr.vmem [resolvable:$true] %s221_s18 }
  0x13   : > { %p3774_p12 = pnand %p3975_p9, %p3106_p11  ;;  %p3493_p0 = scmp.ne.s32.totalorder %s235_s15, %s3492_s19 }
  0x14   : > { %p3500_p3 = scmp.lt.s32.totalorder %s235_s15, %s235_s15  ;;  %p3501_p4 = scmp.lt.s32.totalorder %s3492_s19, %s3492_s19 }
  0x15   : > { %p3483_p13 = pneg %p3774_p12 }
  0x16   : > { %p3502_p7 = por %p3501_p4, %p3500_p3 }
  0x17   : > { %p3495_p1 = pnand %p3493_p0, %p3483_p13 }
  0x19   : > { %p3496_p2 = pneg %p3495_p1 }
  0x1b   : > { %p3503_p8 = pnand %p3502_p7, %p3496_p2 }
  0x1d   : > { %3506 = shalt.err (!%p3503_p8)
}
  0x1e   : > { %s3661_s20 = smov 192   ;;  %s3662_s21 = smov 12  }
  0x1f   : > { %3112 = dma.hbm_to_vmem [thread:$0]  (!%p3774_p12), %s3970_s3, 6144, %s235_s15, [#allocation6], %s3661_s20, %s3661_s20, %s3662_s21  }
  0x20   : > { %s3518_s29 = scalar_lea.vmem %s222_s18, 2048  ;;  %p3526_p9 = scmp.lt.s32.totalorder %s222_s18, %s222_s18 }
  0x21   : > { %p3519_p11 = scmp.ne.s32.totalorder %s222_s18, %s3518_s29  ;;  %p3527_p6 = scmp.lt.s32.totalorder %s3518_s29, %s3518_s29 }
  0x23   : > { %p3521_p0 = pnand %p3519_p11, %p3483_p13  ;;  %p3528_p3 = por %p3527_p6, %p3526_p9 }
  0x25   : > { %p3522_p1 = pneg %p3521_p0 }
  0x27   : > { %p3529_p2 = pnand %p3528_p3, %p3522_p1 }
  0x29   : > { %3532 = shalt.err (!%p3529_p2)
}
  0x2a   : > { %s3663_s8 = smov 128   ;;  %s3664_s9 = smov 8  }
  0x2b   : > { %3109 = dma.hbm_to_vmem [thread:$0]  (!%p3774_p12), %s3969_s2, 2048, %s222_s18, [#allocation3], %s3663_s8, %s3663_s8, %s3664_s9  }
  0x2c   : > { %s3665_s15 = smov [#allocation7]  }
  0x2d   : > { %s247_s19 = sshll.u32 %s3665_s15, 4  ;;  %s248_s19 = int_to_ptr.vmem [resolvable:$true] %s247_s19 }
  0x2e   : > { %s3544_s20 = scalar_lea.vmem %s248_s19, 15360  ;;  %p3552_p9 = scmp.lt.s32.totalorder %s248_s19, %s248_s19 }
  0x2f   : > { %p3545_p4 = scmp.ne.s32.totalorder %s248_s19, %s3544_s20  ;;  %p3553_p8 = scmp.lt.s32.totalorder %s3544_s20, %s3544_s20 }
  0x31   : > { %p3547_p7 = pnand %p3545_p4, %p3483_p13  ;;  %p3554_p11 = por %p3553_p8, %p3552_p9 }
  0x33   : > { %p3548_p6 = pneg %p3547_p7 }
  0x35   : > { %p3555_p0 = pnand %p3554_p11, %p3548_p6 }
  0x37   : > { %3558 = shalt.err (!%p3555_p0)
}
  0x38   : > { %s3666_s21 = smov 320   ;;  %s3667_s22 = smov 20  }
  0x39   : > { %3115 = dma.hbm_to_vmem [thread:$0]  (!%p3774_p12), %s3971_s4, 15360, %s248_s19, [#allocation6], %s3666_s21, %s3666_s21, %s3667_s22  }
  0x3a   : > { %s3668_s29 = smov [#allocation8]  }
  0x3b   : > { %s260_s8 = sshll.u32 %s3668_s29, 4  ;;  %s261_s8 = int_to_ptr.vmem [resolvable:$true] %s260_s8 }
  0x3c   : > { %s3570_s9 = scalar_lea.vmem %s261_s8, 5120  ;;  %p3578_p4 = scmp.lt.s32.totalorder %s261_s8, %s261_s8 }
  0x3d   : > { %p3571_p1 = scmp.ne.s32.totalorder %s261_s8, %s3570_s9  ;;  %p3579_p7 = scmp.lt.s32.totalorder %s3570_s9, %s3570_s9 }
  0x3f   : > { %p3573_p3 = pnand %p3571_p1, %p3483_p13  ;;  %p3580_p6 = por %p3579_p7, %p3578_p4 }
  0x41   : > { %p3574_p2 = pneg %p3573_p3 }
  0x43   : > { %p3581_p9 = pnand %p3580_p6, %p3574_p2 }
  0x45   : > { %3584 = shalt.err (!%p3581_p9)
}
  0x46   : > { %s3669_s14 = smov 64   ;;  %s3670_s17 = smov 4  }
  0x47   : > { %3118 = dma.hbm_to_vmem [thread:$0]  (!%p3774_p12), %s3972_s5, 5120, %s261_s8, [#allocation9], %s3669_s14, %s3669_s14, %s3670_s17  }
  0x48   : > { %288 = sbr.rel (%p3766_p10) target bundleno = 1242 (0x4da), region = 48  ;;  %p3980_p8 = scmp.eq.s32.totalorder (!%p3766_p10), %s3738_s28, 0 }
  0x4d   : > { %3628 = dma.done.wait (%p3980_p8), [#allocation3], 2048   ;;  %p3981_p13 = pmov %p3980_p8 }
  0x4e   : > { %p3982_p11 = pmov %p3980_p8 }
  0x4f   : > { %3630 = vsyncadd (%p3981_p13), [#allocation3], 4294965248 }
  0x50   : > { %3632 = dma.done.wait (%p3982_p11), [#allocation6], 21504   ;;  %p3983_p0 = pmov %p3980_p8 }
  0x52   : > { %3634 = vsyncadd (%p3983_p0), [#allocation6], 4294945792  ;;  %p3984_p1 = pmov %p3983_p0 }
  0x53   : > { %p3985_p12 = pmov %p3983_p0 }
  0x54   : > { %3636 = dma.done.wait (%p3984_p1), [#allocation9], 5120  }
  0x55   : > { %3638 = vsyncadd (%p3985_p12), [#allocation9], 4294962176  ;;  %s2690_s13 = sshll.u32 %s3738_s28, 1  ;;  %v3671_v0 = vmov 0.0   ;;  %vm3672_vm0 = vmmov 0   ;;  %vm355_vm1 = vcmask 1043456  }
  0x56   : > { %3042 = vmatprep.subr.bf16.mxu0 %v3671_v0  ;;  %3044 = vmatprep.mubr.msk.bf16.mxu0 %vm3672_vm0, %v3671_v0  ;;  %p333_p10 = scmp.lt.s32.totalorder %s2690_s13, 3  ;;  %v343_v1 = vld [vmem:[%s3968_s1] sm:$0xf]  ;;  %v3181_v6 = vld [vmem:[#allocation2 + $0x74] ss:$8 sps:$4 sm:$0xff]   ;;  %vm351_vm2 = vcmask 64512  }
  0x57   : > { %v357_v4 = vsel %vm355_vm1, %v343_v1, 0  ;;  %v3183_v7 = vld [vmem:[#allocation2 + $0x70] ss:$8 sps:$4 sm:$0xff]   ;;  %515 = vmatprep.subr.bf16.mxu1 %v3181_v6  ;;  %v3184_v8 = vld [vmem:[#allocation2 + $0x64] ss:$8 sps:$4 sm:$0xff]   ;;  %v3673_v22 = vmov 0  }
  0x58   : > { %s3992_s13 = smov (!%p333_p10, %s2690_s13), 3  ;;  %3043 = vmatpush3.bf16.msra.mxu0 %v357_v4  ;;  %516 = vmatpush1.bf16.msra.mxu1 %v3183_v7  ;;  %v3186_v9 = vld [vmem:[#allocation2 + $0x60] ss:$8 sps:$4 sm:$0xff]   ;;  %v3187_v10 = vld [vmem:[#allocation2 + $0x54] ss:$8 sps:$4 sm:$0xff]   ;;  %s329_s21 = sand.u32 1, %s3649_s25  }
  0x59   : > { %s2691_s16 = sshll.u32 %s3992_s13, 3  ;;  %517 = vmatprep.subr.bf16.mxu1 %v3184_v8  ;;  %v3189_v11 = vld [vmem:[#allocation2 + $0x50] ss:$8 sps:$4 sm:$0xff]   ;;  %v3190_v12 = vld [vmem:[#allocation2 + $0x44] ss:$8 sps:$4 sm:$0xff]   ;;  %547 = vmatprep.mubr.bf16.mxu1 %v3673_v22  ;;  %s2928_s18 = sshll.u32 %s3738_s28, 7 }
  0x5a   : > { %s336_s22 = scalar_lea.vmem %s3967_s0, %s2691_s16  ;;  %v3192_v13 = vld [vmem:[#allocation2 + $0x40] ss:$8 sps:$4 sm:$0xff]   ;;  %v3193_v14 = vld [vmem:[#allocation2 + $0x34] ss:$8 sps:$4 sm:$0xff]   ;;  %v3195_v15 = vld [vmem:[#allocation2 + $0x30] ss:$8 sps:$4 sm:$0xff]   ;;  %s3923_s14 = scalar_lea.hbm %s3974_s7, %s2928_s18 }
  0x5b   : > { %v340_v2 = vld [vmem:[%s336_s22] sm:$0xff]  ;;  %v341_v3 = vld [vmem:[%s336_s22 + $0x8] sm:$0xff]  ;;  %v3199_v18 = vld [vmem:[#allocation2 + $0x14] ss:$8 sps:$4 sm:$0xff]   ;;  %s2689_s22 = sshll.u32 %s329_s21, 3  ;;  %s3927_s17 = scalar_lea.sflag [#allocation4], %s329_s21 }
  0x5c   : > { %v342_v5 = vpack.c.bf16 %v341_v3, %v340_v2  ;;  %518 = vmatpush1.bf16.msra.mxu1 %v3186_v9  ;;  %v3196_v16 = vld [vmem:[#allocation2 + $0x24] ss:$8 sps:$4 sm:$0xff]   ;;  %v3198_v17 = vld [vmem:[#allocation2 + $0x20] ss:$8 sps:$4 sm:$0xff]   ;;  %v3201_v19 = vld [vmem:[#allocation2 + $0x10] ss:$8 sps:$4 sm:$0xff]  }
  0x5d   : > { %519 = vmatprep.subr.bf16.mxu1 %v3187_v10  ;;  %v3202_v20 = vld [vmem:[#allocation2 + $0x4] ss:$8 sps:$4 sm:$0xff]   ;;  %v3204_v21 = vld [vmem:[#allocation2] ss:$8 sps:$4 sm:$0xff]   ;;  %v3208_v26 = vld [vmem:[#allocation5 + $0x90] ss:$12 sps:$4 sm:$0xff]  }
  0x5e   : > { %3045 = vmatmul.mubr.msk.bf16.vlgmr.msra.gmra.mxu0 %vm351_vm2, %v342_v5  ;;  %v3205_v23 = vld [vmem:[#allocation5 + $0xa8] ss:$12 sps:$4 sm:$0xff]   ;;  %v3207_v24 = vld [vmem:[#allocation5 + $0xac] ss:$12 sps:$4 sm:$0xff]   ;;  %v3232_v28 = vld [vmem:[#allocation5 + $0x170] ss:$12 sps:$4 sm:$0xff]  }
  0x5f   : > { %v3210_v25 = vld [vmem:[#allocation5 + $0x94] ss:$12 sps:$4 sm:$0xff]   ;;  %909 = vmatprep.subr.bf16.mxu0 %v3207_v24  ;;  %v3213_v27 = vld [vmem:[#allocation5 + $0x7c] ss:$12 sps:$4 sm:$0xff]   ;;  %v3211_v29 = vld [vmem:[#allocation5 + $0x78] ss:$12 sps:$4 sm:$0xff]  }
  0x60   : > { %520 = vmatpush1.bf16.msra.mxu1 %v3189_v11  ;;  %910 = vmatpush1.bf16.msra.mxu0 %v3205_v23  ;;  %v3216_v30 = vld [vmem:[#allocation5 + $0x64] ss:$12 sps:$4 sm:$0xff]   ;;  %v3214_v31 = vld [vmem:[#allocation5 + $0x60] ss:$12 sps:$4 sm:$0xff]   ;;  %v3217_v33 = vld [vmem:[#allocation5 + $0x48] ss:$12 sps:$4 sm:$0xff]   ;;  %v425_v23 = vlaneseq }
  0x61   : > { %521 = vmatprep.subr.bf16.mxu1 %v3190_v12  ;;  %911 = vmatprep.subr.bf16.mxu0 %v3210_v25  ;;  %v3219_v32 = vld [vmem:[#allocation5 + $0x4c] ss:$12 sps:$4 sm:$0xff]   ;;  %v3222_v34 = vld [vmem:[#allocation5 + $0x34] ss:$12 sps:$4 sm:$0xff]   ;;  %v3220_v35 = vld [vmem:[#allocation5 + $0x30] ss:$12 sps:$4 sm:$0xff]  }
  0x62   : > { %v3225_v36 = vld [vmem:[#allocation5 + $0x1c] ss:$12 sps:$4 sm:$0xff]   ;;  %v3223_v37 = vld [vmem:[#allocation5 + $0x18] ss:$12 sps:$4 sm:$0xff]   ;;  %v3226_v39 = vld [vmem:[#allocation5] ss:$12 sps:$4 sm:$0xff]  }
  0x63   : > { %v3228_v38 = vld [vmem:[#allocation5 + $0x4] ss:$12 sps:$4 sm:$0xff]   ;;  %v3231_v40 = vld [vmem:[#allocation5 + $0x16c] ss:$12 sps:$4 sm:$0xff]   ;;  %v3229_v41 = vld [vmem:[#allocation5 + $0x168] ss:$12 sps:$4 sm:$0xff]  }
  0x64   : > { %522 = vmatpush1.bf16.msra.mxu1 %v3192_v13  ;;  %912 = vmatpush1.bf16.msra.mxu0 %v3208_v26  ;;  %v3236_v42 = vld [vmem:[#allocation5 + $0x154] ss:$12 sps:$4 sm:$0xff]   ;;  %v3234_v43 = vld [vmem:[#allocation5 + $0x150] ss:$12 sps:$4 sm:$0xff]   ;;  %v3239_v45 = vld [vmem:[#allocation5 + $0x138] ss:$12 sps:$4 sm:$0xff]  }
  0x65   : > { %523 = vmatprep.subr.bf16.mxu1 %v3193_v14  ;;  %913 = vmatprep.subr.bf16.mxu0 %v3213_v27  ;;  %v3241_v44 = vld [vmem:[#allocation5 + $0x13c] ss:$12 sps:$4 sm:$0xff]   ;;  %v3246_v46 = vld [vmem:[#allocation5 + $0x124] ss:$12 sps:$4 sm:$0xff]   ;;  %v3244_v47 = vld [vmem:[#allocation5 + $0x120] ss:$12 sps:$4 sm:$0xff]  }
  0x66   : > { %v3251_v48 = vld [vmem:[#allocation5 + $0x10c] ss:$12 sps:$4 sm:$0xff]   ;;  %v3249_v49 = vld [vmem:[#allocation5 + $0x108] ss:$12 sps:$4 sm:$0xff]   ;;  %v2692_v50 = vld [vmem:[%s3973_s6] ss:$0 sm:$0xff] }
  0x67   : > { %v3233_v61 = vld [vmem:[#allocation5 + $0xb0] ss:$12 sps:$4 sm:$0xff]   ;;  %v3237_v63 = vld [vmem:[#allocation5 + $0x158] ss:$12 sps:$4 sm:$0xff]   ;;  %v3242_v2 = vld [vmem:[#allocation5 + $0x140] ss:$12 sps:$4 sm:$0xff]  }
  0x68   : > { %524 = vmatpush1.bf16.msra.mxu1 %v3195_v15  ;;  %914 = vmatpush1.bf16.msra.mxu0 %v3211_v29  ;;  %v3238_v1 = vld [vmem:[#allocation5 + $0x98] ss:$12 sps:$4 sm:$0xff]   ;;  %v3243_v3 = vld [vmem:[#allocation5 + $0x80] ss:$12 sps:$4 sm:$0xff]   ;;  %v3247_v4 = vld [vmem:[#allocation5 + $0x128] ss:$12 sps:$4 sm:$0xff]  }
  0x69   : > { %525 = vmatprep.subr.bf16.mxu1 %v3196_v16  ;;  %915 = vmatprep.subr.bf16.mxu0 %v3216_v30  ;;  %v3248_v5 = vld [vmem:[#allocation5 + $0x68] ss:$12 sps:$4 sm:$0xff]   ;;  %v3252_v6 = vld [vmem:[#allocation5 + $0x110] ss:$12 sps:$4 sm:$0xff]   ;;  %v3257_v9 = vld [vmem:[#allocation5 + $0xf8] ss:$12 sps:$4 sm:$0xff]  }
  0x6a   : > { %v3253_v7 = vld [vmem:[#allocation5 + $0x50] ss:$12 sps:$4 sm:$0xff]   ;;  %v3256_v8 = vld [vmem:[#allocation5 + $0xf4] ss:$12 sps:$4 sm:$0xff]   ;;  %v3258_v11 = vld [vmem:[#allocation5 + $0x38] ss:$12 sps:$4 sm:$0xff]  }
  0x6b   : > { %v3254_v10 = vld [vmem:[#allocation5 + $0xf0] ss:$12 sps:$4 sm:$0xff]   ;;  %v3262_v13 = vld [vmem:[#allocation5 + $0xe0] ss:$12 sps:$4 sm:$0xff]   ;;  %v3259_v14 = vld [vmem:[#allocation5 + $0xd8] ss:$12 sps:$4 sm:$0xff]  }
  0x6c   : > { %526 = vmatpush1.bf16.msra.mxu1 %v3198_v17  ;;  %916 = vmatpush1.bf16.msra.mxu0 %v3214_v31  ;;  %v3261_v12 = vld [vmem:[#allocation5 + $0xdc] ss:$12 sps:$4 sm:$0xff]   ;;  %v3263_v15 = vld [vmem:[#allocation5 + $0x20] ss:$12 sps:$4 sm:$0xff]   ;;  %v3266_v16 = vld [vmem:[#allocation5 + $0xc4] ss:$12 sps:$4 sm:$0xff]  }
  0x6d   : > { %527 = vmatprep.subr.bf16.mxu1 %v3199_v18  ;;  %917 = vmatprep.subr.bf16.mxu0 %v3219_v32  ;;  %v3267_v17 = vld [vmem:[#allocation5 + $0xc8] ss:$12 sps:$4 sm:$0xff]   ;;  %v3264_v18 = vld [vmem:[#allocation5 + $0xc0] ss:$12 sps:$4 sm:$0xff]   ;;  %v3840_v24 = vshrl.u32 %v425_v23, 7  ;;  %s331_s23 = scalar_lea.vmem [#allocation10], %s2689_s22 }
  0x6e   : > { %v423_v27 = vld [vmem:[%s3973_s6 + $0x1] sm:$0x3]  ;;  %v3326_v23 = vld [vmem:[#allocation7 + $0x2d0] ss:$20 sps:$4 sm:$0xff]   ;;  %s2574_s29 = sshll.u32 %s331_s23, 4  ;;  %s3674_s28 = smov [#allocation10]   ;;  %s3925_s29 = int_to_ptr.vmem [resolvable:$true] %s2574_s29 }
  0x6f   : > { %v3843_v25 = vsub.s32 1, %v3840_v24  ;;  %v3846_v26 = vsub.s32 0, %v3840_v24  ;;  %s3585_s15 = scalar_lea.vmem %s3925_s29, 128  ;;  %s3589_s19 = sshll.u32 %s3674_s28, 4  ;;  %s3590_s19 = int_to_ptr.vmem [resolvable:$false] %s3589_s19 }
  0x70   : > { %528 = vmatpush1.bf16.msra.mxu1 %v3201_v19  ;;  %918 = vmatpush1.bf16.msra.mxu0 %v3217_v33  ;;  %v3268_v19 = vld [vmem:[#allocation5 + $0x8] ss:$12 sps:$4 sm:$0xff]   ;;  %p3586_p3 = scmp.ne.s32.totalorder %s3925_s29, %s3585_s15  ;;  %s3591_s13 = scalar_lea.vmem %s3590_s19, 256 }
  0x71   : > { %529 = vmatprep.subr.bf16.mxu1 %v3202_v20  ;;  %919 = vmatprep.subr.bf16.mxu0 %v3222_v34  ;;  %v3271_v20 = vld [vmem:[#allocation7 + $0x11c] ss:$20 sps:$4 sm:$0xff]   ;;  %v428_v29 = vrot.slane %v423_v27, %v3846_v26  ;;  %p3592_p7 = scmp.lt.s32.totalorder %s3925_s29, %s3590_s19  ;;  %p3593_p6 = scmp.lt.s32.totalorder %s3591_s13, %s3585_s15 }
  0x72   : > { %p3587_p2 = pnand %p3586_p3, %p3755_p5 }
  0x73   : > { %p3594_p9 = por %p3593_p6, %p3592_p7 }
  0x74   : > { %530 = vmatpush1.bf16.msra.mxu1 %v3204_v21  ;;  %920 = vmatpush1.bf16.msra.mxu0 %v3220_v35  ;;  %v3298_v21 = vld [vmem:[#allocation7 + $0x39c] ss:$20 sps:$4 sm:$0xff]   ;;  %p3588_p4 = pneg %p3587_p2 }
  0x75   : > { %2936 = vmatprep.subr.bf16.mxu1 %v3232_v28  ;;  %921 = vmatprep.subr.bf16.mxu0 %v3225_v36  ;;  %v432_v28 = vrot.slane %v423_v27, %v3843_v25  ;;  %v3331_v27 = vld [vmem:[#allocation7 + $0x16c] ss:$20 sps:$4 sm:$0xff]  }
  0x76   : > { %p3595_p8 = pnand %p3594_p9, %p3588_p4 }
  0x78   : > { %922 = vmatpush1.bf16.msra.mxu0 %v3223_v37 }
  0x79   : > { %923 = vmatprep.subr.bf16.mxu0 %v3228_v38 }
  0x7c   : > { %924 = vmatpush1.bf16.msra.mxu0 %v3226_v39 }
  0x7d   : > { %925 = vmatprep.subr.bf16.mxu0 %v3231_v40 }
  0x80   : > { %926 = vmatpush2.bf16.msra.mxu0 %v3229_v41 }
  0x81   : > { %927 = vmatprep.subr.bf16.mxu0 %v3236_v42 }
  0x84   : > { %928 = vmatpush2.bf16.msra.mxu0 %v3234_v43 }
  0x85   : > { %929 = vmatprep.subr.bf16.mxu0 %v3241_v44 }
  0x88   : > { %930 = vmatpush2.bf16.msra.mxu0 %v3239_v45 }
  0x89   : > { %931 = vmatprep.subr.bf16.mxu0 %v3246_v46 }
  0x8c   : > { %932 = vmatpush2.bf16.msra.mxu0 %v3244_v47  ;;  %v3269_v47 = vld [vmem:[#allocation7 + $0x118] ss:$20 sps:$4 sm:$0xff]  }
  0x8d   : > { %933 = vmatprep.subr.bf16.mxu0 %v3251_v48  ;;  %v3296_v48 = vld [vmem:[#allocation7 + $0x398] ss:$20 sps:$4 sm:$0xff]  }
  0x90   : > { %934 = vmatpush2.bf16.msra.mxu0 %v3249_v49 }
  0x91   : > { %935 = vmatprep.subr.bf16.mxu0 %v3256_v8  ;;  %v3290_v8 = vld [vmem:[#allocation7] ss:$20 sps:$4 sm:$0xff]  }
  0x94   : > { %936 = vmatpush2.bf16.msra.mxu0 %v3254_v10  ;;  %v3293_v10 = vld [vmem:[#allocation7 + $0x258] ss:$20 sps:$4 sm:$0xff]  }
  0x95   : > { %937 = vmatprep.subr.bf16.mxu0 %v3261_v12  ;;  %v3299_v12 = vld [vmem:[#allocation7 + $0x230] ss:$20 sps:$4 sm:$0xff]  }
  0x98   : > { %938 = vmatpush2.bf16.msra.mxu0 %v3259_v14  ;;  %v3305_v14 = vld [vmem:[#allocation7 + $0x208] ss:$20 sps:$4 sm:$0xff]  }
  0x99   : > { %939 = vmatprep.subr.bf16.mxu0 %v3266_v16  ;;  %v3311_v16 = vld [vmem:[#allocation7 + $0x1e0] ss:$20 sps:$4 sm:$0xff]  }
  0x9c   : > { %940 = vmatpush2.bf16.msra.mxu0 %v3264_v18  ;;  %v3317_v18 = vld [vmem:[#allocation7 + $0x1b8] ss:$20 sps:$4 sm:$0xff]  }
  0x9d   : > { %1852 = vmatprep.subr.bf16.mxu0 %v3298_v21  ;;  %v3328_v21 = vld [vmem:[#allocation7 + $0x2d4] ss:$20 sps:$4 sm:$0xff]  }
 0x11e   : > { %v393_v51 = vpop.f32.mrf.mxu0 }
 0x11f   : > { %v394_v52 = vadd.f32 %v2692_v50, %v393_v51  ;;  %v3304_v51 = vld [vmem:[#allocation7 + $0x374] ss:$20 sps:$4 sm:$0xff]  }
 0x120   : > { %v3046_v53 = vpop.f32.mrf.mxu0 }
 0x121   : > { %v402_v55 = vmul.f32 0.01, %v394_v52  ;;  %vm400_vm3 = vcmp.gt.f32.partialorder %v394_v52, 0.0  ;;  %v3302_v53 = vld [vmem:[#allocation7 + $0x370] ss:$20 sps:$4 sm:$0xff]  }
 0x122   : > { %v396_v54 = vpop.f32.mrf.mxu0 }
 0x123   : > { %v397_v56 = vadd.f32 %v2692_v50, %v396_v54  ;;  %v404_v59 = vsel %vm400_vm3, %v394_v52, %v402_v55  ;;  %v3274_v50 = vld [vmem:[#allocation7 + $0xf4] ss:$20 sps:$4 sm:$0xff]   ;;  %v3272_v52 = vld [vmem:[#allocation7 + $0xf0] ss:$20 sps:$4 sm:$0xff]   ;;  %v3277_v54 = vld [vmem:[#allocation7 + $0xcc] ss:$20 sps:$4 sm:$0xff]  }
 0x124   : > { %v3047_v57 = vpop.f32.mrf.mxu0  ;;  %v3310_v55 = vld [vmem:[#allocation7 + $0x34c] ss:$20 sps:$4 sm:$0xff]  }
 0x125   : > { %vm401_vm4 = vcmp.gt.f32.partialorder %v397_v56, 0.0  ;;  %v403_v58 = vmul.f32 0.01, %v397_v56  ;;  %v3308_v57 = vld [vmem:[#allocation7 + $0x348] ss:$20 sps:$4 sm:$0xff]  }
 0x127   : > { %v405_v60 = vsel %vm401_vm4, %v397_v56, %v403_v58  ;;  %v3275_v56 = vld [vmem:[#allocation7 + $0xc8] ss:$20 sps:$4 sm:$0xff]   ;;  %v3280_v58 = vld [vmem:[#allocation7 + $0xa4] ss:$20 sps:$4 sm:$0xff]  }
 0x128   : > { %v406_v62 = vpack.c.bf16 %v405_v60, %v404_v59  ;;  %v3316_v59 = vld [vmem:[#allocation7 + $0x324] ss:$20 sps:$4 sm:$0xff]   ;;  %v3278_v60 = vld [vmem:[#allocation7 + $0xa0] ss:$20 sps:$4 sm:$0xff]  }
 0x12a   : > { %548 = vmatmul.mubr.bf16.vlgmr.msra.gmra.mxu1 %v406_v62  ;;  %v3283_v62 = vld [vmem:[#allocation7 + $0x7c] ss:$20 sps:$4 sm:$0xff]  }
 0x12b   : > { %2937 = vmatpush3.bf16.msra.mxu1 %v3233_v61  ;;  %v3314_v61 = vld [vmem:[#allocation7 + $0x320] ss:$20 sps:$4 sm:$0xff]  }
 0x12c   : > { %2938 = vmatprep.subr.bf16.mxu1 %v3237_v63  ;;  %v3322_v63 = vld [vmem:[#allocation7 + $0x2fc] ss:$20 sps:$4 sm:$0xff]  }
 0x12f   : > { %2939 = vmatpush3.bf16.msra.mxu1 %v3238_v1  ;;  %v3281_v1 = vld [vmem:[#allocation7 + $0x78] ss:$20 sps:$4 sm:$0xff]  }
 0x130   : > { %2940 = vmatprep.subr.bf16.mxu1 %v3242_v2  ;;  %v3320_v2 = vld [vmem:[#allocation7 + $0x2f8] ss:$20 sps:$4 sm:$0xff]  }
 0x133   : > { %2941 = vmatpush3.bf16.msra.mxu1 %v3243_v3  ;;  %v3286_v3 = vld [vmem:[#allocation7 + $0x54] ss:$20 sps:$4 sm:$0xff]  }
 0x134   : > { %2942 = vmatprep.subr.bf16.mxu1 %v3247_v4  ;;  %v3284_v4 = vld [vmem:[#allocation7 + $0x50] ss:$20 sps:$4 sm:$0xff]  }
 0x137   : > { %2943 = vmatpush3.bf16.msra.mxu1 %v3248_v5  ;;  %v3289_v5 = vld [vmem:[#allocation7 + $0x2c] ss:$20 sps:$4 sm:$0xff]  }
 0x138   : > { %2944 = vmatprep.subr.bf16.mxu1 %v3252_v6  ;;  %v3287_v6 = vld [vmem:[#allocation7 + $0x28] ss:$20 sps:$4 sm:$0xff]  }
 0x13b   : > { %2945 = vmatpush3.bf16.msra.mxu1 %v3253_v7  ;;  %v3292_v7 = vld [vmem:[#allocation7 + $0x4] ss:$20 sps:$4 sm:$0xff]  }
 0x13c   : > { %2946 = vmatprep.subr.bf16.mxu1 %v3257_v9  ;;  %v3295_v9 = vld [vmem:[#allocation7 + $0x25c] ss:$20 sps:$4 sm:$0xff]  }
 0x13f   : > { %2947 = vmatpush3.bf16.msra.mxu1 %v3258_v11  ;;  %v3301_v11 = vld [vmem:[#allocation7 + $0x234] ss:$20 sps:$4 sm:$0xff]  }
 0x140   : > { %2948 = vmatprep.subr.bf16.mxu1 %v3262_v13  ;;  %v3307_v13 = vld [vmem:[#allocation7 + $0x20c] ss:$20 sps:$4 sm:$0xff]  }
 0x143   : > { %2949 = vmatpush3.bf16.msra.mxu1 %v3263_v15  ;;  %v3313_v15 = vld [vmem:[#allocation7 + $0x1e4] ss:$20 sps:$4 sm:$0xff]  }
 0x144   : > { %2950 = vmatprep.subr.bf16.mxu1 %v3267_v17  ;;  %v3319_v17 = vld [vmem:[#allocation7 + $0x1bc] ss:$20 sps:$4 sm:$0xff]  }
 0x147   : > { %2951 = vmatpush3.bf16.msra.mxu1 %v3268_v19  ;;  %v3325_v19 = vld [vmem:[#allocation7 + $0x194] ss:$20 sps:$4 sm:$0xff]  }
 0x148   : > { %1809 = vmatprep.subr.bf16.mxu1 %v3271_v20  ;;  %v3323_v20 = vld [vmem:[#allocation7 + $0x190] ss:$20 sps:$4 sm:$0xff]  }
 0x1ea   : > { %v549_v30 = vpop.f32.mrf.mxu1 }
 0x1eb   : > { %v550_v33 = vadd.f32 %v549_v30, %v428_v29  ;;  %v3332_v30 = vld [vmem:[#allocation7 + $0x2a8] ss:$20 sps:$4 sm:$0xff]  }
 0x1ec   : > { %v551_v31 = vpop.f32.mrf.mxu1 }
 0x1ed   : > { %v552_v32 = vadd.f32 %v551_v31, %v432_v28  ;;  %v562_v40 = vmul.f32 0.01, %v550_v33  ;;  %vm558_vm7 = vcmp.gt.f32.partialorder %v550_v33, 0.0  ;;  %v3337_v31 = vld [vmem:[#allocation7 + $0x144] ss:$20 sps:$4 sm:$0xff]  }
 0x1ee   : > { %v553_v34 = vpop.f32.mrf.mxu1 }
 0x1ef   : > { %v554_v35 = vadd.f32 %v553_v34, %v428_v29  ;;  %v563_v37 = vmul.f32 0.01, %v552_v32  ;;  %vm559_vm6 = vcmp.gt.f32.partialorder %v552_v32, 0.0  ;;  %v566_v45 = vsel %vm558_vm7, %v550_v33, %v562_v40  ;;  %v3334_v29 = vld [vmem:[#allocation7 + $0x2ac] ss:$20 sps:$4 sm:$0xff]  }
 0x1f0   : > { %v555_v36 = vpop.f32.mrf.mxu1  ;;  %v3340_v33 = vld [vmem:[#allocation7 + $0x284] ss:$20 sps:$4 sm:$0xff]   ;;  %v3338_v34 = vld [vmem:[#allocation7 + $0x280] ss:$20 sps:$4 sm:$0xff]  }
 0x1f1   : > { %vm560_vm5 = vcmp.gt.f32.partialorder %v554_v35, 0.0  ;;  %v564_v38 = vmul.f32 0.01, %v554_v35  ;;  %v556_v39 = vadd.f32 %v555_v36, %v432_v28  ;;  %v567_v43 = vsel %vm559_vm6, %v552_v32, %v563_v37  ;;  %v3329_v28 = vld [vmem:[#allocation7 + $0x168] ss:$20 sps:$4 sm:$0xff]  }
 0x1f2   : > { %v3335_v32 = vld [vmem:[#allocation7 + $0x140] ss:$20 sps:$4 sm:$0xff]   ;;  %v3346_v36 = vld [vmem:[#allocation7 + $0x124] ss:$20 sps:$4 sm:$0xff]  }
 0x1f3   : > { %vm561_vm8 = vcmp.gt.f32.partialorder %v556_v39, 0.0  ;;  %v565_v41 = vmul.f32 0.01, %v556_v39  ;;  %v568_v42 = vsel %vm560_vm5, %v554_v35, %v564_v38  ;;  %v3343_v35 = vld [vmem:[#allocation7 + $0x3a4] ss:$20 sps:$4 sm:$0xff]   ;;  %v648_v38 = vsub.s32 2, %v3840_v24 }
 0x1f4   : > { %v570_v49 = vpack.c.bf16 %v568_v42, %v566_v45  ;;  %v636_v37 = vld [vmem:[%s3973_s6 + $0x3] sm:$0x7] }
 0x1f5   : > { %v569_v44 = vsel %vm561_vm8, %v556_v39, %v565_v41  ;;  %v641_v39 = vrot.slane %v636_v37, %v3846_v26  ;;  %v645_v40 = vrot.slane %v636_v37, %v3843_v25 }
 0x1f6   : > { %v571_v46 = vpack.c.bf16 %v569_v44, %v567_v43  ;;  %v649_v43 = vrot.slane %v636_v37, %v648_v38  ;;  %v3377_v37 = vld [vmem:[#allocation7 + $0x2b0] ss:$20 sps:$4 sm:$0xff]  }
 0x1f8   : > { %941 = vmatprep.mubr.bf16.mxu0 %v571_v46  ;;  %984 = vmatprep.mubr.bf16.mxu1 %v571_v46 }
 0x1f9   : > { %942 = vmatmul.mubr.bf16.vlgmr.msra.gmra.mxu0 %v570_v49  ;;  %985 = vmatmul.mubr.bf16.vlgmr.msra.gmra.mxu1 %v570_v49 }
 0x1fa   : > { %1810 = vmatpush1.bf16.msra.mxu1 %v3269_v47  ;;  %1853 = vmatpush1.bf16.msra.mxu0 %v3296_v48 }
 0x1fb   : > { %1811 = vmatprep.subr.bf16.mxu1 %v3274_v50  ;;  %1854 = vmatprep.subr.bf16.mxu0 %v3304_v51 }
 0x1fc   : > { %1884 = vmatprep.mubr.bf16.mxu0 %v3673_v22 }
 0x1fe   : > { %1812 = vmatpush1.bf16.msra.mxu1 %v3272_v52  ;;  %1855 = vmatpush1.bf16.msra.mxu0 %v3302_v53 }
 0x1ff   : > { %1813 = vmatprep.subr.bf16.mxu1 %v3277_v54  ;;  %1856 = vmatprep.subr.bf16.mxu0 %v3310_v55 }
 0x202   : > { %1814 = vmatpush1.bf16.msra.mxu1 %v3275_v56  ;;  %1857 = vmatpush1.bf16.msra.mxu0 %v3308_v57 }
 0x203   : > { %1815 = vmatprep.subr.bf16.mxu1 %v3280_v58  ;;  %1858 = vmatprep.subr.bf16.mxu0 %v3316_v59 }
 0x206   : > { %1816 = vmatpush1.bf16.msra.mxu1 %v3278_v60  ;;  %1859 = vmatpush1.bf16.msra.mxu0 %v3314_v61 }
 0x207   : > { %1817 = vmatprep.subr.bf16.mxu1 %v3283_v62  ;;  %1860 = vmatprep.subr.bf16.mxu0 %v3322_v63 }
 0x20a   : > { %1818 = vmatpush1.bf16.msra.mxu1 %v3281_v1  ;;  %1861 = vmatpush1.bf16.msra.mxu0 %v3320_v2 }
 0x20b   : > { %1819 = vmatprep.subr.bf16.mxu1 %v3286_v3  ;;  %1862 = vmatprep.subr.bf16.mxu0 %v3328_v21  ;;  %v3364_v21 = vld [vmem:[#allocation7 + $0xac] ss:$20 sps:$4 sm:$0xff]  }
 0x20e   : > { %1820 = vmatpush1.bf16.msra.mxu1 %v3284_v4  ;;  %1863 = vmatpush1.bf16.msra.mxu0 %v3326_v23  ;;  %v3359_v23 = vld [vmem:[#allocation7 + $0x328] ss:$20 sps:$4 sm:$0xff]  }
 0x20f   : > { %1821 = vmatprep.subr.bf16.mxu1 %v3289_v5  ;;  %1864 = vmatprep.subr.bf16.mxu0 %v3334_v29  ;;  %v3370_v29 = vld [vmem:[#allocation7 + $0x84] ss:$20 sps:$4 sm:$0xff]  }
 0x212   : > { %1822 = vmatpush1.bf16.msra.mxu1 %v3287_v6  ;;  %1865 = vmatpush1.bf16.msra.mxu0 %v3332_v30  ;;  %v3341_v6 = vld [vmem:[#allocation7 + $0x3a0] ss:$20 sps:$4 sm:$0xff]  }
 0x213   : > { %1823 = vmatprep.subr.bf16.mxu1 %v3292_v7  ;;  %1866 = vmatprep.subr.bf16.mxu0 %v3340_v33  ;;  %v3365_v30 = vld [vmem:[#allocation7 + $0x300] ss:$20 sps:$4 sm:$0xff]   ;;  %v3371_v33 = vld [vmem:[#allocation7 + $0x2d8] ss:$20 sps:$4 sm:$0xff]  }
 0x216   : > { %1824 = vmatpush1.bf16.msra.mxu1 %v3290_v8  ;;  %1867 = vmatpush1.bf16.msra.mxu0 %v3338_v34  ;;  %v3374_v34 = vld [vmem:[#allocation7 + $0x58] ss:$20 sps:$4 sm:$0xff]  }
 0x217   : > { %1825 = vmatprep.subr.bf16.mxu1 %v3295_v9  ;;  %1895 = vmatprep.subr.bf16.mxu0 %v3346_v36  ;;  %v3382_v36 = vld [vmem:[#allocation7 + $0x34] ss:$20 sps:$4 sm:$0xff]  }
 0x21a   : > { %1826 = vmatpush2.bf16.msra.mxu1 %v3293_v10  ;;  %v3344_v10 = vld [vmem:[#allocation7 + $0x120] ss:$20 sps:$4 sm:$0xff]  }
 0x21b   : > { %1827 = vmatprep.subr.bf16.mxu1 %v3301_v11 }
 0x21e   : > { %1828 = vmatpush2.bf16.msra.mxu1 %v3299_v12  ;;  %v3349_v12 = vld [vmem:[#allocation7 + $0x37c] ss:$20 sps:$4 sm:$0xff]  }
 0x21f   : > { %1829 = vmatprep.subr.bf16.mxu1 %v3307_v13  ;;  %v3352_v13 = vld [vmem:[#allocation7 + $0xfc] ss:$20 sps:$4 sm:$0xff]  }
 0x222   : > { %1830 = vmatpush2.bf16.msra.mxu1 %v3305_v14  ;;  %v3347_v14 = vld [vmem:[#allocation7 + $0x378] ss:$20 sps:$4 sm:$0xff]  }
 0x223   : > { %1831 = vmatprep.subr.bf16.mxu1 %v3313_v15  ;;  %v3350_v15 = vld [vmem:[#allocation7 + $0xf8] ss:$20 sps:$4 sm:$0xff]  }
 0x226   : > { %1832 = vmatpush2.bf16.msra.mxu1 %v3311_v16  ;;  %v3355_v16 = vld [vmem:[#allocation7 + $0x354] ss:$20 sps:$4 sm:$0xff]  }
 0x227   : > { %1833 = vmatprep.subr.bf16.mxu1 %v3319_v17  ;;  %v3358_v17 = vld [vmem:[#allocation7 + $0xd4] ss:$20 sps:$4 sm:$0xff]  }
 0x22a   : > { %1834 = vmatpush2.bf16.msra.mxu1 %v3317_v18  ;;  %v3353_v18 = vld [vmem:[#allocation7 + $0x350] ss:$20 sps:$4 sm:$0xff]  }
 0x22b   : > { %1835 = vmatprep.subr.bf16.mxu1 %v3325_v19  ;;  %v3356_v19 = vld [vmem:[#allocation7 + $0xd0] ss:$20 sps:$4 sm:$0xff]  }
 0x22e   : > { %1836 = vmatpush2.bf16.msra.mxu1 %v3323_v20  ;;  %v3361_v20 = vld [vmem:[#allocation7 + $0x32c] ss:$20 sps:$4 sm:$0xff]  }
 0x22f   : > { %1837 = vmatprep.subr.bf16.mxu1 %v3331_v27  ;;  %v3362_v27 = vld [vmem:[#allocation7 + $0xa8] ss:$20 sps:$4 sm:$0xff]  }
 0x232   : > { %1838 = vmatpush2.bf16.msra.mxu1 %v3329_v28  ;;  %v3367_v28 = vld [vmem:[#allocation7 + $0x304] ss:$20 sps:$4 sm:$0xff]  }
 0x233   : > { %1839 = vmatprep.subr.bf16.mxu1 %v3337_v31  ;;  %v3373_v31 = vld [vmem:[#allocation7 + $0x2dc] ss:$20 sps:$4 sm:$0xff]  }
 0x236   : > { %1840 = vmatpush2.bf16.msra.mxu1 %v3335_v32  ;;  %v3376_v32 = vld [vmem:[#allocation7 + $0x5c] ss:$20 sps:$4 sm:$0xff]  }
 0x237   : > { %1938 = vmatprep.subr.bf16.mxu1 %v3343_v35  ;;  %v3379_v35 = vld [vmem:[#allocation7 + $0x2b4] ss:$20 sps:$4 sm:$0xff]  }
 0x2b9   : > { %v943_v41 = vpop.f32.mrf.mxu0  ;;  %v2952_v42 = vpop.f32.mrf.mxu1 }
 0x2ba   : > { %v944_v46 = vadd.f32 %v943_v41, %v641_v39  ;;  %v3388_v41 = vld [vmem:[#allocation7 + $0xc] ss:$20 sps:$4 sm:$0xff]  }
 0x2bb   : > { %v945_v44 = vpop.f32.mrf.mxu0  ;;  %v2953_v45 = vpop.f32.mrf.mxu1 }
 0x2bc   : > { %v946_v47 = vadd.f32 %v945_v44, %v645_v40  ;;  %v2954_v48 = vadd.f32 %v2953_v45, %v2952_v42  ;;  %vm993_vm9 = vcmp.gt.f32.partialorder %v944_v46, 0.0  ;;  %v999_v58 = vmul.f32 0.01, %v944_v46  ;;  %v3383_v42 = vld [vmem:[#allocation7 + $0x288] ss:$20 sps:$4 sm:$0xff]  }
 0x2bd   : > { %v947_v49 = vpop.f32.mrf.mxu0  ;;  %v2955_v50 = vpop.f32.mrf.mxu1  ;;  %v3389_v44 = vld [vmem:[#allocation7 + $0x268] ss:$20 sps:$4 sm:$0xff]   ;;  %v3392_v45 = vld [vmem:[#allocation7 + $0x264] ss:$20 sps:$4 sm:$0xff]  }
 0x2be   : > { %v987_v51 = vadd.f32 %v2954_v48, %v649_v43  ;;  %v948_v52 = vadd.f32 %v947_v49, %v641_v39  ;;  %v1000_v55 = vmul.f32 0.01, %v946_v47  ;;  %vm994_vm10 = vcmp.gt.f32.partialorder %v946_v47, 0.0  ;;  %v3380_v39 = vld [vmem:[#allocation7 + $0x30] ss:$20 sps:$4 sm:$0xff]  }
 0x2bf   : > { %v949_v53 = vpop.f32.mrf.mxu0  ;;  %v2956_v54 = vpop.f32.mrf.mxu1  ;;  %v1005_v4 = vsel %vm993_vm9, %v944_v46, %v999_v58  ;;  %v3393_v46 = vld [vmem:[#allocation7 + $0x128] ss:$20 sps:$4 sm:$0xff]   ;;  %v3394_v48 = vld [vmem:[#allocation7 + $0x240] ss:$20 sps:$4 sm:$0xff]   ;;  %v3408_v58 = vld [vmem:[#allocation7 + $0xb0] ss:$20 sps:$4 sm:$0xff]  }
 0x2c0   : > { %v950_v56 = vadd.f32 %v949_v53, %v645_v40  ;;  %v2957_v57 = vadd.f32 %v2956_v54, %v2955_v50  ;;  %vm996_vm11 = vcmp.gt.f32.partialorder %v948_v52, 0.0  ;;  %v1002_v59 = vmul.f32 0.01, %v948_v52  ;;  %v3385_v40 = vld [vmem:[#allocation7 + $0x28c] ss:$20 sps:$4 sm:$0xff]  }
 0x2c1   : > { %v1001_v60 = vmul.f32 0.01, %v987_v51  ;;  %vm995_vm13 = vcmp.gt.f32.partialorder %v987_v51, 0.0  ;;  %v1006_v2 = vsel %vm994_vm10, %v946_v47, %v1000_v55  ;;  %v3390_v47 = vld [vmem:[#allocation7 + $0x260] ss:$20 sps:$4 sm:$0xff]  }
 0x2c2   : > { %vm997_vm12 = vcmp.gt.f32.partialorder %v950_v56, 0.0  ;;  %v1003_v61 = vmul.f32 0.01, %v950_v56  ;;  %v990_v62 = vadd.f32 %v2957_v57, %v649_v43  ;;  %v1008_v63 = vsel %vm996_vm11, %v948_v52, %v1002_v59  ;;  %v3386_v43 = vld [vmem:[#allocation7 + $0x8] ss:$20 sps:$4 sm:$0xff]  }
 0x2c3   : > { %v1007_v7 = vsel %vm995_vm13, %v987_v51, %v1001_v60  ;;  %v3865_v8 = vpack.c.bf16 %v1008_v63, %v1005_v4  ;;  %v3397_v49 = vld [vmem:[#allocation7 + $0x23c] ss:$20 sps:$4 sm:$0xff]   ;;  %v3398_v50 = vld [vmem:[#allocation7 + $0x100] ss:$20 sps:$4 sm:$0xff]   ;;  %v3395_v51 = vld [vmem:[#allocation7 + $0x238] ss:$20 sps:$4 sm:$0xff]  }
 0x2c4   : > { %vm998_vm14 = vcmp.gt.f32.partialorder %v990_v62, 0.0  ;;  %v1004_v1 = vmul.f32 0.01, %v990_v62  ;;  %v1009_v3 = vsel %vm997_vm12, %v950_v56, %v1003_v61  ;;  %v3399_v52 = vld [vmem:[#allocation7 + $0x218] ss:$20 sps:$4 sm:$0xff]  }
 0x2c5   : > { %v3863_v5 = vpack.c.bf16 %v1009_v3, %v1006_v2  ;;  %v3402_v53 = vld [vmem:[#allocation7 + $0x214] ss:$20 sps:$4 sm:$0xff]   ;;  %v3403_v54 = vld [vmem:[#allocation7 + $0xd8] ss:$20 sps:$4 sm:$0xff]   ;;  %v3400_v55 = vld [vmem:[#allocation7 + $0x210] ss:$20 sps:$4 sm:$0xff]  }
 0x2c6   : > { %v1010_v9 = vsel %vm998_vm14, %v990_v62, %v1004_v1  ;;  %v3404_v56 = vld [vmem:[#allocation7 + $0x1f0] ss:$20 sps:$4 sm:$0xff]   ;;  %v3407_v57 = vld [vmem:[#allocation7 + $0x1ec] ss:$20 sps:$4 sm:$0xff]   ;;  %v3405_v59 = vld [vmem:[#allocation7 + $0x1e8] ss:$20 sps:$4 sm:$0xff]  }
 0x2c7   : > { %1841 = vmatprep.mubr.bf16.mxu1 %v3863_v5  ;;  %v3868_v11 = vpack.c.bf16 %v1010_v9, %v1007_v7  ;;  %v3409_v60 = vld [vmem:[#allocation7 + $0x1c8] ss:$20 sps:$4 sm:$0xff]   ;;  %v3412_v61 = vld [vmem:[#allocation7 + $0x1c4] ss:$20 sps:$4 sm:$0xff]   ;;  %v3410_v63 = vld [vmem:[#allocation7 + $0x1c0] ss:$20 sps:$4 sm:$0xff]  }
 0x2c8   : > { %1842 = vmatmul.mubr.bf16.vlgmr.msra.gmra.mxu1 %v3865_v8  ;;  %v3413_v62 = vld [vmem:[#allocation7 + $0x88] ss:$20 sps:$4 sm:$0xff]   ;;  %v3414_v1 = vld [vmem:[#allocation7 + $0x1a0] ss:$20 sps:$4 sm:$0xff]   ;;  %v3415_v4 = vld [vmem:[#allocation7 + $0x198] ss:$20 sps:$4 sm:$0xff]  }
 0x2c9   : > { %1939 = vmatpush1.bf16.msra.mxu1 %v3341_v6  ;;  %1885 = vmatmul.mubr.bf16.vlgmr.msra.gmra.mxu0 %v3868_v11  ;;  %v3417_v2 = vld [vmem:[#allocation7 + $0x19c] ss:$20 sps:$4 sm:$0xff]   ;;  %v3418_v3 = vld [vmem:[#allocation7 + $0x60] ss:$20 sps:$4 sm:$0xff]   ;;  %v3423_v7 = vld [vmem:[#allocation7 + $0x38] ss:$20 sps:$4 sm:$0xff]  }
 0x2ca   : > { %1896 = vmatpush1.bf16.msra.mxu0 %v3344_v10  ;;  %1927 = vmatprep.mubr.bf16.mxu0 %v3863_v5  ;;  %v3422_v6 = vld [vmem:[#allocation7 + $0x174] ss:$20 sps:$4 sm:$0xff]   ;;  %v3420_v9 = vld [vmem:[#allocation7 + $0x170] ss:$20 sps:$4 sm:$0xff]  }
 0x2cb   : > { %1940 = vmatprep.subr.bf16.mxu1 %v3349_v12  ;;  %1897 = vmatprep.subr.bf16.mxu0 %v3352_v13  ;;  %v3424_v10 = vld [vmem:[#allocation7 + $0x150] ss:$20 sps:$4 sm:$0xff]   ;;  %v3427_v12 = vld [vmem:[#allocation7 + $0x14c] ss:$20 sps:$4 sm:$0xff]  }
 0x2cc   : > { %1970 = vmatprep.mubr.bf16.mxu1 %v3673_v22  ;;  %v3368_v22 = vld [vmem:[#allocation7 + $0x80] ss:$20 sps:$4 sm:$0xff]   ;;  %v3428_v13 = vld [vmem:[#allocation7 + $0x10] ss:$20 sps:$4 sm:$0xff]  }
 0x2cd   : > { %1941 = vmatpush1.bf16.msra.mxu1 %v3347_v14  ;;  %v3425_v14 = vld [vmem:[#allocation7 + $0x148] ss:$20 sps:$4 sm:$0xff]  }
 0x2ce   : > { %1898 = vmatpush1.bf16.msra.mxu0 %v3350_v15  ;;  %1942 = vmatprep.subr.bf16.mxu1 %v3355_v16  ;;  %v3437_v15 = vld [vmem:[#allocation8 + $0x78] sm:$0xff]  }
 0x2cf   : > { %1899 = vmatprep.subr.bf16.mxu0 %v3358_v17  ;;  %v3438_v16 = vld [vmem:[#allocation8 + $0x38] sm:$0xff]  }
 0x2d0   : > { %v3429_v17 = vld [vmem:[#allocation7 + $0x3a8] ss:$20 sps:$4 sm:$0xff]  }
 0x2d1   : > { %1943 = vmatpush1.bf16.msra.mxu1 %v3353_v18  ;;  %v3439_v18 = vld [vmem:[#allocation8 + $0x70] sm:$0xff]  }
 0x2d2   : > { %1900 = vmatpush1.bf16.msra.mxu0 %v3356_v19  ;;  %1944 = vmatprep.subr.bf16.mxu1 %v3361_v20  ;;  %v3440_v19 = vld [vmem:[#allocation8 + $0x30] sm:$0xff]  }
 0x2d3   : > { %1901 = vmatprep.subr.bf16.mxu0 %v3364_v21  ;;  %v3430_v20 = vld [vmem:[#allocation7 + $0x380] ss:$20 sps:$4 sm:$0xff]   ;;  %v3441_v21 = vld [vmem:[#allocation8 + $0x68] sm:$0xff]  }
 0x2d5   : > { %1945 = vmatpush1.bf16.msra.mxu1 %v3359_v23  ;;  %v3442_v23 = vld [vmem:[#allocation8 + $0x28] sm:$0xff]  }
 0x2d6   : > { %1902 = vmatpush1.bf16.msra.mxu0 %v3362_v27  ;;  %1946 = vmatprep.subr.bf16.mxu1 %v3367_v28  ;;  %v3431_v27 = vld [vmem:[#allocation7 + $0x358] ss:$20 sps:$4 sm:$0xff]   ;;  %v3443_v28 = vld [vmem:[#allocation8 + $0x60] sm:$0xff]  }
 0x2d7   : > { %1903 = vmatprep.subr.bf16.mxu0 %v3370_v29  ;;  %v3432_v29 = vld [vmem:[#allocation7 + $0x330] ss:$20 sps:$4 sm:$0xff]  }
 0x2d9   : > { %1947 = vmatpush1.bf16.msra.mxu1 %v3365_v30  ;;  %v3445_v30 = vld [vmem:[#allocation8 + $0x58] sm:$0xff]  }
 0x2da   : > { %1904 = vmatpush1.bf16.msra.mxu0 %v3368_v22  ;;  %1948 = vmatprep.subr.bf16.mxu1 %v3373_v31  ;;  %v3446_v22 = vld [vmem:[#allocation8 + $0x18] sm:$0xff]  }
 0x2db   : > { %1905 = vmatprep.subr.bf16.mxu0 %v3376_v32  ;;  %v3433_v31 = vld [vmem:[#allocation7 + $0x308] ss:$20 sps:$4 sm:$0xff]   ;;  %v3447_v32 = vld [vmem:[#allocation8 + $0x50] sm:$0xff]  }
 0x2dd   : > { %1949 = vmatpush1.bf16.msra.mxu1 %v3371_v33  ;;  %v3448_v33 = vld [vmem:[#allocation8 + $0x10] sm:$0xff]  }
 0x2de   : > { %1906 = vmatpush1.bf16.msra.mxu0 %v3374_v34  ;;  %1950 = vmatprep.subr.bf16.mxu1 %v3379_v35  ;;  %v3434_v34 = vld [vmem:[#allocation7 + $0x2e0] ss:$20 sps:$4 sm:$0xff]   ;;  %v3449_v35 = vld [vmem:[#allocation8 + $0x48] sm:$0xff]  }
 0x2df   : > { %1907 = vmatprep.subr.bf16.mxu0 %v3382_v36  ;;  %v3450_v36 = vld [vmem:[#allocation8 + $0x8] sm:$0xff]  }
 0x2e1   : > { %1951 = vmatpush1.bf16.msra.mxu1 %v3377_v37  ;;  %v3435_v37 = vld [vmem:[#allocation7 + $0x2b8] ss:$20 sps:$4 sm:$0xff]  }
 0x2e2   : > { %1908 = vmatpush1.bf16.msra.mxu0 %v3380_v39  ;;  %1952 = vmatprep.subr.bf16.mxu1 %v3385_v40  ;;  %v3451_v39 = vld [vmem:[#allocation8 + $0x40] sm:$0xff]  }
 0x2e3   : > { %1909 = vmatprep.subr.bf16.mxu0 %v3388_v41  ;;  %v3452_v40 = vld [vmem:[#allocation8] sm:$0xff]  }
 0x2e4   : > { %v3436_v41 = vld [vmem:[#allocation7 + $0x290] ss:$20 sps:$4 sm:$0xff]  }
 0x2e5   : > { %1953 = vmatpush1.bf16.msra.mxu1 %v3383_v42  ;;  %v3453_v42 = vld [vmem:[#allocation8 + $0xf8] sm:$0xff]  }
 0x2e6   : > { %1910 = vmatpush1.bf16.msra.mxu0 %v3386_v43  ;;  %2958 = vmatprep.subr.bf16.mxu1 %v3389_v44  ;;  %v3454_v43 = vld [vmem:[#allocation8 + $0xb8] sm:$0xff]   ;;  %v3455_v44 = vld [vmem:[#allocation8 + $0xf0] sm:$0xff]  }
 0x2e7   : > { %1911 = vmatprep.subr.bf16.mxu0 %v3392_v45  ;;  %v3456_v45 = vld [vmem:[#allocation8 + $0xb0] sm:$0xff]  }
 0x2e8   : > { %1971 = vmatmul.mubr.bf16.vlgmr.msra.gmra.mxu1 %v3868_v11 }
 0x2e9   : > { %2959 = vmatpush3.bf16.msra.mxu1 %v3393_v46  ;;  %2013 = vmatprep.mubr.bf16.mxu1 %v3863_v5  ;;  %v3419_v5 = vld [vmem:[#allocation7 + $0x178] ss:$20 sps:$4 sm:$0xff]  }
 0x2ea   : > { %1912 = vmatpush2.bf16.msra.mxu0 %v3390_v47  ;;  %2960 = vmatprep.subr.bf16.mxu1 %v3394_v48  ;;  %v3457_v46 = vld [vmem:[#allocation8 + $0xe8] sm:$0xff]   ;;  %v3459_v48 = vld [vmem:[#allocation8 + $0xe0] sm:$0xff]  }
 0x2eb   : > { %1913 = vmatprep.subr.bf16.mxu0 %v3397_v49  ;;  %v3458_v47 = vld [vmem:[#allocation8 + $0xa8] sm:$0xff]   ;;  %v3460_v49 = vld [vmem:[#allocation8 + $0xa0] sm:$0xff]  }
 0x2ed   : > { %2961 = vmatpush3.bf16.msra.mxu1 %v3398_v50  ;;  %v3461_v50 = vld [vmem:[#allocation8 + $0xd8] sm:$0xff]  }
 0x2ee   : > { %1914 = vmatpush2.bf16.msra.mxu0 %v3395_v51  ;;  %2962 = vmatprep.subr.bf16.mxu1 %v3399_v52  ;;  %v3462_v51 = vld [vmem:[#allocation8 + $0x98] sm:$0xff]   ;;  %v3464_v52 = vld [vmem:[#allocation8 + $0x90] sm:$0xff]  }
 0x2ef   : > { %1915 = vmatprep.subr.bf16.mxu0 %v3402_v53  ;;  %v3465_v53 = vld [vmem:[#allocation8 + $0xc8] sm:$0xff]  }
 0x2f1   : > { %2963 = vmatpush3.bf16.msra.mxu1 %v3403_v54  ;;  %v3466_v54 = vld [vmem:[#allocation8 + $0x88] sm:$0xff]  }
 0x2f2   : > { %1916 = vmatpush2.bf16.msra.mxu0 %v3400_v55  ;;  %2964 = vmatprep.subr.bf16.mxu1 %v3404_v56  ;;  %v3467_v55 = vld [vmem:[#allocation8 + $0xc0] sm:$0xff]  }
 0x2f3   : > { %1917 = vmatprep.subr.bf16.mxu0 %v3407_v57  ;;  %v3469_v56 = vld [vmem:[#allocation8 + $0x80] sm:$0xff]  }
 0x2f4   : > { %v3893_v57 = vld [vmem:[%s3973_s6 + $0x6] sm:$0x1f] }
 0x2f5   : > { %2965 = vmatpush3.bf16.msra.mxu1 %v3408_v58  ;;  %v1163_v58 = vrot.slane %v3893_v57, %v3846_v26 }
 0x2f6   : > { %1918 = vmatpush2.bf16.msra.mxu0 %v3405_v59  ;;  %2966 = vmatprep.subr.bf16.mxu1 %v3409_v60  ;;  %v1167_v59 = vrot.slane %v3893_v57, %v3843_v25 }
 0x2f7   : > { %1919 = vmatprep.subr.bf16.mxu0 %v3412_v61 }
 0x2f9   : > { %2967 = vmatpush3.bf16.msra.mxu1 %v3413_v62 }
 0x2fa   : > { %1920 = vmatpush2.bf16.msra.mxu0 %v3410_v63  ;;  %2968 = vmatprep.subr.bf16.mxu1 %v3414_v1 }
 0x2fb   : > { %1921 = vmatprep.subr.bf16.mxu0 %v3417_v2 }
 0x2fd   : > { %2969 = vmatpush3.bf16.msra.mxu1 %v3418_v3 }
 0x2fe   : > { %1922 = vmatpush2.bf16.msra.mxu0 %v3415_v4  ;;  %2970 = vmatprep.subr.bf16.mxu1 %v3419_v5 }
 0x2ff   : > { %1923 = vmatprep.subr.bf16.mxu0 %v3422_v6 }
 0x301   : > { %2971 = vmatpush3.bf16.msra.mxu1 %v3423_v7 }
 0x302   : > { %1924 = vmatpush2.bf16.msra.mxu0 %v3420_v9  ;;  %2972 = vmatprep.subr.bf16.mxu1 %v3424_v10 }
 0x303   : > { %1925 = vmatprep.subr.bf16.mxu0 %v3427_v12 }
 0x305   : > { %2973 = vmatpush3.bf16.msra.mxu1 %v3428_v13 }
 0x306   : > { %1926 = vmatpush2.bf16.msra.mxu0 %v3425_v14  ;;  %2989 = vmatprep.subr.bf16.mxu1 %v3437_v15 }
 0x307   : > { %3048 = vmatprep.subr.bf16.mxu0 %v3671_v0 }
 0x308   : > { %2014 = vmatmul.mubr.bf16.vlgmr.msra.gmra.mxu1 %v3865_v8 }
 0x309   : > { %1928 = vmatmul.mubr.bf16.vlgmr.msra.gmra.mxu0 %v3865_v8  ;;  %2990 = vmatpush3.bf16.msra.mxu1 %v3438_v16  ;;  %v3444_v8 = vld [vmem:[#allocation8 + $0x20] sm:$0xff]  }
 0x30a   : > { %3049 = vmatpush3.bf16.msra.mxu0 %v3429_v17  ;;  %3064 = vmatprep.mubr.msk.bf16.mxu0 %vm3672_vm0, %v3671_v0 }
 0x30b   : > { %3050 = vmatprep.subr.bf16.mxu0 %v3671_v0  ;;  %2991 = vmatprep.subr.bf16.mxu1 %v3439_v18 }
 0x30d   : > { %2992 = vmatpush3.bf16.msra.mxu1 %v3440_v19 }
 0x30e   : > { %3051 = vmatpush3.bf16.msra.mxu0 %v3430_v20  ;;  %2993 = vmatprep.subr.bf16.mxu1 %v3441_v21 }
 0x30f   : > { %3052 = vmatprep.subr.bf16.mxu0 %v3671_v0 }
 0x311   : > { %2994 = vmatpush3.bf16.msra.mxu1 %v3442_v23  ;;  %v3468_v23 = vld [vmem:[#allocation8 + $0x138] sm:$0xff]  }
 0x312   : > { %3053 = vmatpush3.bf16.msra.mxu0 %v3431_v27  ;;  %2995 = vmatprep.subr.bf16.mxu1 %v3443_v28  ;;  %v3470_v28 = vld [vmem:[#allocation8 + $0x130] sm:$0xff]  }
 0x313   : > { %3054 = vmatprep.subr.bf16.mxu0 %v3671_v0 }
 0x315   : > { %2996 = vmatpush3.bf16.msra.mxu1 %v3444_v8  ;;  %v3471_v8 = vld [vmem:[#allocation8 + $0x128] sm:$0xff]  }
 0x316   : > { %3055 = vmatpush3.bf16.msra.mxu0 %v3432_v29  ;;  %2997 = vmatprep.subr.bf16.mxu1 %v3445_v30  ;;  %v3472_v29 = vld [vmem:[#allocation8 + $0x120] sm:$0xff]   ;;  %v3473_v30 = vld [vmem:[#allocation8 + $0x118] sm:$0xff]  }
 0x317   : > { %3056 = vmatprep.subr.bf16.mxu0 %v3671_v0 }
 0x319   : > { %2998 = vmatpush3.bf16.msra.mxu1 %v3446_v22  ;;  %v3474_v22 = vld [vmem:[#allocation8 + $0x110] sm:$0xff]  }
 0x31a   : > { %3057 = vmatpush3.bf16.msra.mxu0 %v3433_v31  ;;  %2999 = vmatprep.subr.bf16.mxu1 %v3447_v32  ;;  %v3475_v31 = vld [vmem:[#allocation8 + $0x108] sm:$0xff]   ;;  %v3476_v32 = vld [vmem:[#allocation8 + $0x100] sm:$0xff]  }
 0x31b   : > { %3058 = vmatprep.subr.bf16.mxu0 %v3671_v0 }
 0x31d   : > { %3000 = vmatpush3.bf16.msra.mxu1 %v3448_v33  ;;  %v1174_v33 = vsub.s32 3, %v3840_v24 }
 0x31e   : > { %3059 = vmatpush3.bf16.msra.mxu0 %v3434_v34  ;;  %3001 = vmatprep.subr.bf16.mxu1 %v3449_v35  ;;  %v1171_v35 = vrot.slane %v3893_v57, %v648_v38 }
 0x31f   : > { %3060 = vmatprep.subr.bf16.mxu0 %v3671_v0 }
 0x321   : > { %3002 = vmatpush3.bf16.msra.mxu1 %v3450_v36  ;;  %v1175_v36 = vrot.slane %v3893_v57, %v1174_v33 }
 0x322   : > { %3061 = vmatpush3.bf16.msra.mxu0 %v3435_v37  ;;  %3003 = vmatprep.subr.bf16.mxu1 %v3451_v39 }
 0x323   : > { %3062 = vmatprep.subr.bf16.mxu0 %v3671_v0 }
 0x325   : > { %3004 = vmatpush3.bf16.msra.mxu1 %v3452_v40 }
 0x326   : > { %3063 = vmatpush3.bf16.msra.mxu0 %v3436_v41  ;;  %3068 = vmatprep.subr.bf16.mxu1 %v3671_v0 }
 0x327   : > { %3011 = vmatprep.subr.bf16.mxu0 %v3453_v42 }
 0x329   : > { %3065 = vmatmul.mubr.bf16.vlgmr.msra.gmra.mxu0 %v3868_v11  ;;  %v3463_v11 = vld [vmem:[#allocation8 + $0xd0] sm:$0xff]  }
 0x32a   : > { %3012 = vmatpush3.bf16.msra.mxu0 %v3454_v43 }
 0x32b   : > { %3013 = vmatprep.subr.bf16.mxu0 %v3455_v44 }
 0x32e   : > { %3014 = vmatpush3.bf16.msra.mxu0 %v3456_v45 }
 0x32f   : > { %3015 = vmatprep.subr.bf16.mxu0 %v3457_v46 }
 0x332   : > { %3016 = vmatpush3.bf16.msra.mxu0 %v3458_v47 }
 0x333   : > { %3017 = vmatprep.subr.bf16.mxu0 %v3459_v48 }
 0x336   : > { %3018 = vmatpush3.bf16.msra.mxu0 %v3460_v49 }
 0x337   : > { %3019 = vmatprep.subr.bf16.mxu0 %v3461_v50 }
 0x33a   : > { %3020 = vmatpush3.bf16.msra.mxu0 %v3462_v51 }
 0x33b   : > { %3021 = vmatprep.subr.bf16.mxu0 %v3463_v11 }
 0x33e   : > { %3022 = vmatpush3.bf16.msra.mxu0 %v3464_v52 }
 0x33f   : > { %3023 = vmatprep.subr.bf16.mxu0 %v3465_v53 }
 0x342   : > { %3024 = vmatpush3.bf16.msra.mxu0 %v3466_v54 }
 0x343   : > { %3025 = vmatprep.subr.bf16.mxu0 %v3467_v55 }
 0x346   : > { %3026 = vmatpush3.bf16.msra.mxu0 %v3469_v56 }
 0x388   : > { %v1843_v60 = vpop.f32.mrf.mxu1 }
 0x389   : > { %v1886_v61 = vpop.f32.mrf.mxu0  ;;  %v1844_v63 = vadd.f32 %v1843_v60, %v1163_v58 }
 0x38a   : > { %v1845_v62 = vpop.f32.mrf.mxu1 }
 0x38b   : > { %v1846_v1 = vadd.f32 %v1845_v62, %v1167_v59  ;;  %v1888_v2 = vpop.f32.mrf.mxu0  ;;  %v1887_v9 = vadd.f32 %v1886_v61, %v1844_v63  ;;  %v1178_v63 = vsub.s32 4, %v3840_v24 }
 0x38c   : > { %v1847_v3 = vpop.f32.mrf.mxu1 }
 0x38d   : > { %v1848_v4 = vadd.f32 %v1847_v3, %v1163_v58  ;;  %v1890_v5 = vpop.f32.mrf.mxu0  ;;  %v1889_v6 = vadd.f32 %v1888_v2, %v1846_v1  ;;  %v2073_v25 = vmul.f32 0.01, %v1887_v9  ;;  %vm2063_vm2 = vcmp.gt.f32.partialorder %v1887_v9, 0.0 }
 0x38e   : > { %v1849_v7 = vpop.f32.mrf.mxu1  ;;  %v1179_v3 = vrot.slane %v3893_v57, %v1178_v63 }
 0x38f   : > { %v1891_v10 = vadd.f32 %v1890_v5, %v1848_v4  ;;  %v1892_v12 = vpop.f32.mrf.mxu0  ;;  %v1850_v13 = vadd.f32 %v1849_v7, %v1167_v59  ;;  %v2074_v26 = vmul.f32 0.01, %v1889_v6  ;;  %vm2064_vm1 = vcmp.gt.f32.partialorder %v1889_v6, 0.0 }
 0x390   : > { %v2083_v20 = vsel %vm2063_vm2, %v1887_v9, %v2073_v25 }
 0x391   : > { %v2078_v14 = vmul.f32 0.01, %v1891_v10  ;;  %vm2068_vm15 = vcmp.gt.f32.partialorder %v1891_v10, 0.0  ;;  %v1893_v15 = vadd.f32 %v1892_v12, %v1850_v13  ;;  %v2084_v18 = vsel %vm2064_vm1, %v1889_v6, %v2074_v26 }
 0x393   : > { %vm2069_vm3 = vcmp.gt.f32.partialorder %v1893_v15, 0.0  ;;  %v2079_v16 = vmul.f32 0.01, %v1893_v15  ;;  %v2088_v17 = vsel %vm2068_vm15, %v1891_v10, %v2078_v14 }
 0x394   : > { %v2093_v27 = vpack.c.bf16 %v2088_v17, %v2083_v20 }
 0x395   : > { %v2089_v19 = vsel %vm2069_vm3, %v1893_v15, %v2079_v16 }
 0x396   : > { %v2094_v21 = vpack.c.bf16 %v2089_v19, %v2084_v18 }
 0x398   : > { %2457 = vmatprep.mubr.bf16.mxu1 %v2094_v21 }
 0x399   : > { %2458 = vmatmul.mubr.bf16.vlgmr.msra.gmra.mxu1 %v2093_v27 }
 0x39a   : > { %3069 = vmatpush3.bf16.msra.mxu1 %v3468_v23  ;;  %3084 = vmatprep.mubr.msk.bf16.mxu1 %vm3672_vm0, %v3671_v0 }
 0x39b   : > { %3070 = vmatprep.subr.bf16.mxu1 %v3671_v0 }
 0x39e   : > { %3071 = vmatpush3.bf16.msra.mxu1 %v3470_v28 }
 0x39f   : > { %3072 = vmatprep.subr.bf16.mxu1 %v3671_v0 }
 0x3a2   : > { %3073 = vmatpush3.bf16.msra.mxu1 %v3471_v8  ;;  %v2878_v8 = vld [vmem:[%s3973_s6 + $0xb] ss:$0 sm:$0xff] }
 0x3a3   : > { %3074 = vmatprep.subr.bf16.mxu1 %v3671_v0 }
 0x3a6   : > { %3075 = vmatpush3.bf16.msra.mxu1 %v3472_v29 }
 0x3a7   : > { %3076 = vmatprep.subr.bf16.mxu1 %v3671_v0 }
 0x3a8   : > { %v1972_v34 = vpop.f32.mrf.mxu1 }
 0x3aa   : > { %3077 = vmatpush3.bf16.msra.mxu1 %v3473_v30  ;;  %v1974_v39 = vpop.f32.mrf.mxu1 }
 0x3ab   : > { %3078 = vmatprep.subr.bf16.mxu1 %v3671_v0 }
 0x3ac   : > { %v1976_v44 = vpop.f32.mrf.mxu1 }
 0x3ae   : > { %3079 = vmatpush3.bf16.msra.mxu1 %v3474_v22  ;;  %v1978_v50 = vpop.f32.mrf.mxu1 }
 0x3af   : > { %3080 = vmatprep.subr.bf16.mxu1 %v3671_v0 }
 0x3b2   : > { %3081 = vmatpush3.bf16.msra.mxu1 %v3475_v31 }
 0x3b3   : > { %3082 = vmatprep.subr.bf16.mxu1 %v3671_v0 }
 0x3b6   : > { %3083 = vmatpush3.bf16.msra.mxu1 %v3476_v32 }
 0x3c8   : > { %v2974_v60 = vpop.f32.mrf.mxu1 }
 0x3c9   : > { %v1929_v37 = vpop.f32.mrf.mxu0 }
 0x3ca   : > { %v1930_v41 = vadd.f32 %v1929_v37, %v1171_v35  ;;  %v2975_v62 = vpop.f32.mrf.mxu1 }
 0x3cb   : > { %v1931_v40 = vpop.f32.mrf.mxu0  ;;  %v2976_v2 = vadd.f32 %v2975_v62, %v2974_v60 }
 0x3cc   : > { %v1932_v42 = vadd.f32 %v1931_v40, %v1175_v36  ;;  %v1973_v47 = vadd.f32 %v1972_v34, %v1930_v41  ;;  %v2977_v1 = vpop.f32.mrf.mxu1 }
 0x3cd   : > { %v1933_v43 = vpop.f32.mrf.mxu0  ;;  %v2016_v6 = vadd.f32 %v2976_v2, %v1179_v3 }
 0x3ce   : > { %v1934_v45 = vadd.f32 %v1933_v43, %v1171_v35  ;;  %v1975_v46 = vadd.f32 %v1974_v39, %v1932_v42  ;;  %v2075_v52 = vmul.f32 0.01, %v1973_v47  ;;  %vm2065_vm5 = vcmp.gt.f32.partialorder %v1973_v47, 0.0  ;;  %v2978_v4 = vpop.f32.mrf.mxu1 }
 0x3cf   : > { %v1935_v0 = vpop.f32.mrf.mxu0  ;;  %v2979_v5 = vadd.f32 %v2978_v4, %v2977_v1 }
 0x3d0   : > { %v1977_v48 = vadd.f32 %v1976_v44, %v1934_v45  ;;  %v1936_v49 = vadd.f32 %v1935_v0, %v1175_v36  ;;  %v2076_v11 = vmul.f32 0.01, %v1975_v46  ;;  %vm2066_vm4 = vcmp.gt.f32.partialorder %v1975_v46, 0.0 }
 0x3d1   : > { %v2085_v58 = vsel %vm2065_vm5, %v1973_v47, %v2075_v52  ;;  %v2019_v12 = vadd.f32 %v2979_v5, %v1179_v3 }
 0x3d2   : > { %v2080_v51 = vmul.f32 0.01, %v1977_v48  ;;  %vm2070_vm0 = vcmp.gt.f32.partialorder %v1977_v48, 0.0  ;;  %v1979_v38 = vadd.f32 %v1978_v50, %v1936_v49  ;;  %v2086_v55 = vsel %vm2066_vm4, %v1975_v46, %v2076_v11 }
 0x3d4   : > { %vm2071_vm6 = vcmp.gt.f32.partialorder %v1979_v38, 0.0  ;;  %v2081_v53 = vmul.f32 0.01, %v1979_v38  ;;  %v2090_v54 = vsel %vm2070_vm0, %v1977_v48, %v2080_v51 }
 0x3d5   : > { %v2095_v61 = vpack.c.bf16 %v2090_v54, %v2085_v58 }
 0x3d6   : > { %v2091_v56 = vsel %vm2071_vm6, %v1979_v38, %v2081_v53 }
 0x3d7   : > { %v2096_v59 = vpack.c.bf16 %v2091_v56, %v2086_v55 }
 0x3d9   : > { %2498 = vmatprep.mubr.bf16.mxu0 %v2096_v59 }
 0x3da   : > { %2499 = vmatmul.mubr.bf16.vlgmr.msra.gmra.mxu0 %v2095_v61 }
 0x3e9   : > { %v2056_v7 = vpop.f32.mrf.mxu0 }
 0x3ea   : > { %v2057_v9 = vadd.f32 %v2056_v7, %v2016_v6 }
 0x3eb   : > { %v3066_v10 = vpop.f32.mrf.mxu0 }
 0x3ec   : > { %v2077_v14 = vmul.f32 0.01, %v2057_v9  ;;  %vm2067_vm7 = vcmp.gt.f32.partialorder %v2057_v9, 0.0 }
 0x3ed   : > { %v2059_v13 = vpop.f32.mrf.mxu0 }
 0x3ee   : > { %v2060_v26 = vadd.f32 %v2059_v13, %v2019_v12  ;;  %v2087_v16 = vsel %vm2067_vm7, %v2057_v9, %v2077_v14 }
 0x3ef   : > { %v3067_v15 = vpop.f32.mrf.mxu0 }
 0x3f0   : > { %vm2072_vm8 = vcmp.gt.f32.partialorder %v2060_v26, 0.0  ;;  %v2082_v25 = vmul.f32 0.01, %v2060_v26 }
 0x3f2   : > { %v2092_v24 = vsel %vm2072_vm8, %v2060_v26, %v2082_v25 }
 0x3f3   : > { %v2097_v17 = vpack.c.bf16 %v2092_v24, %v2087_v16 }
 0x3f5   : > { %3085 = vmatmul.mubr.bf16.vlgmr.msra.gmra.mxu1 %v2097_v17 }
 0x459   : > { %v3005_v18 = vpop.f32.mrf.mxu1 }
 0x45b   : > { %v3006_v19 = vpop.f32.mrf.mxu1 }
 0x45c   : > { %v3007_v27 = vadd.f32 %v3006_v19, %v3005_v18 }
 0x45d   : > { %v3008_v21 = vpop.f32.mrf.mxu1 }
 0x45e   : > { %v2460_v31 = vadd.f32 %v3007_v27, %v2878_v8 }
 0x45f   : > { %v3009_v28 = vpop.f32.mrf.mxu1 }
 0x460   : > { %v3010_v22 = vadd.f32 %v3009_v28, %v3008_v21 }
 0x462   : > { %v2463_v35 = vadd.f32 %v3010_v22, %v2878_v8 }
 0x49a   : > { %v3027_v57 = vpop.f32.mrf.mxu0 }
 0x49c   : > { %v3028_v20 = vpop.f32.mrf.mxu0 }
 0x49d   : > { %v3029_v29 = vadd.f32 %v3028_v20, %v3027_v57 }
 0x49e   : > { %v3030_v23 = vpop.f32.mrf.mxu0 }
 0x49f   : > { %v2501_v33 = vadd.f32 %v3029_v29, %v2460_v31 }
 0x4a0   : > { %v3031_v30 = vpop.f32.mrf.mxu0 }
 0x4a1   : > { %v3032_v32 = vadd.f32 %v3031_v30, %v3030_v23 }
 0x4a3   : > { %v2504_v39 = vadd.f32 %v3032_v32, %v2463_v35 }
 0x4b5   : > { %v2541_v34 = vpop.f32.mrf.mxu1 }
 0x4b6   : > { %v2542_v36 = vadd.f32 %v2541_v34, %v2501_v33 }
 0x4b7   : > { %v3086_v37 = vpop.f32.mrf.mxu1 }
 0x4b8   : > { %3477 = vtanh.f32 %v2542_v36 }
 0x4b9   : > { %v2544_v40 = vpop.f32.mrf.mxu1 }
 0x4ba   : > { %v2545_v41 = vadd.f32 %v2544_v40, %v2504_v39 }
 0x4bb   : > { %v3087_v42 = vpop.f32.mrf.mxu1 }
 0x4bc   : > { %3479 = vtanh.f32 %v2545_v41 }
 0x4c5   : > { %v3478_v43 = vpop.eup %3477 }
 0x4c9   : > { %v3480_v44 = vpop.eup %3479 }
 0x4ca   : > { %v2932_v45 = vpack.c.bf16 %v3480_v44, %v3478_v43 }
 0x4cc   : > { %2933 = vst [vmem:[%s331_s23] sm:$0xff] %v2932_v45  }
 0x4cd   : > { %3598 = shalt.err (!%p3595_p8)
}
 0x4ce   : > { %s3599_s16 = scalar_lea.hbm %s3923_s14, 128  ;;  %s3603_s22 = scalar_lea.hbm %s3974_s7, 256 }
 0x4cf   : > { %p3600_p13 = scmp.ne.s32.totalorder %s3923_s14, %s3599_s16  ;;  %p3604_p1 = scmp.lt.s32.totalorder %s3923_s14, %s3974_s7 }
 0x4d0   : > { %p3605_p12 = scmp.lt.s32.totalorder %s3603_s22, %s3599_s16 }
 0x4d1   : > { %p3601_p11 = pnand %p3600_p13, %p3755_p5 }
 0x4d2   : > { %p3606_p10 = por %p3605_p12, %p3604_p1 }
 0x4d3   : > { %p3602_p0 = pneg %p3601_p11 }
 0x4d5   : > { %p3607_p3 = pnand %p3606_p10, %p3602_p0 }
 0x4d7   : > { %3610 = shalt.err (!%p3607_p3)
}
 0x4d8   : > { %s3675_s8 = smov 64   ;;  %s3676_s9 = smov 4  }
 0x4d9   : > { %3104 = dma.vmem_to_hbm [thread:$0]  (%p3755_p5), %s3925_s29, 128, %s3923_s14, %s3927_s17, %s3675_s8, %s3675_s8, %s3676_s9  }
 0x4da PF: > { %p3131_p2 = scmp.ge.s32.totalorder %s3657_s27, 2  ;;  %s2589_s15 = sand.u32 1, %s3645_s24  }
 0x4db   : > { %p3986_p4 = scmp.ne.s32.totalorder %s3977_s12, 0  ;;  %s2590_s28 = scalar_lea.sflag [#allocation4], %s2589_s15 }
 0x4dd   : > { %p3120_p7 = pnand %p3131_p2, %p3986_p4 }
 0x4df   : > { %p3121_p6 = pneg %p3120_p7 }
 0x4e1   : > { %3640 = dma.done.wait (%p3121_p6), %s2590_s28, 128  }
 0x4e2   : > { %3642 = vsyncadd (%p3121_p6), %s2590_s28, 4294967168  ;;  %p20_p9 = scmp.ge.s32.totalorder %s3742_s30, 4   ;;  %s3987_s24 = smov %s3649_s25 }
 0x4e3   : > { %s3988_s25 = smov %s3653_s26  ;;  %s3989_s26 = smov %s3753_s10 }
 0x4e4   : > { %s3990_s27 = smov %s3742_s30  ;;  %22 = sbr.rel (!%p20_p9) target bundleno = 6 (0x6), region = 100 }
 0x4e9   :  { %2595 = vsyncpa [#allocation3], 1 }
 0x4ea   :  { %2597 = vsyncpa [#allocation3 + $0x1], 1 }
 0x4eb   :  { %2598 = vsyncpa [#allocation6], 1 }
 0x4ec   :  { %2599 = vsyncpa [#allocation9], 1 }
 0x4ed   :  { %2600 = vsyncpa [#allocation4], 1 }
 0x4ee   :  { %2602 = vsyncpa [#allocation4 + $0x1], 1 }

</bundles_post_ra>
